<compile_context>
chip_gen: v5e
topology: v5e:2x2
jax: 0.10.0
libtpu: 0.0.40
codegen_flags: <defaults>
</compile_context>

<pallas_src>
import jax
import jax.numpy as jnp
from jax import lax
from jax.experimental import pallas as pl
from jax.experimental.pallas import tpu as pltpu

LN_EPS = 1e-5


# --------------------------------------------------------------------------- kernel

def _make_kernel(dim, mid, H, Bb, bias_col):
    """Kernel factory; all sizes are baked in as static Python constants."""
    R1 = 3 * mid                 # fused q1/k1/v1 output channels
    O2 = 3 * R1                  # row offset of the q2 tap blocks in the weight slab
    O3 = O2 + 3 * mid            # row offset of the k2 tap blocks

    def kernel(x_ref, wb_ref, ln_ref, out_ref):
        # ---- packed parameters: loaded once per grid step, shared by all Bb batches
        w1 = [wb_ref[k * R1:(k + 1) * R1, 0:dim] for k in range(3)]   # 3 x (3*mid, dim)
        b1 = wb_ref[0:R1, bias_col:bias_col + 1]                      # (3*mid, 1)
        wq = [wb_ref[O2 + k * mid:O2 + (k + 1) * mid, 0:mid] for k in range(3)]
        bq = wb_ref[O2:O2 + mid, bias_col:bias_col + 1]               # (mid, 1)
        wk = [wb_ref[O3 + k * mid:O3 + (k + 1) * mid, 0:mid] for k in range(3)]
        bk = wb_ref[O3:O3 + mid, bias_col:bias_col + 1]               # (mid, 1)

        gamma = ln_ref[0:mid, :]                 # LayerNorm gamma * bn_w   (mid, H)
        beta = ln_ref[mid:2 * mid, :]            # LayerNorm beta  * bn_w   (mid, H)
        bnb = ln_ref[2 * mid:2 * mid + 1, :]     # bottleneck bias, replicated (1, H)

        # Boundary masks for 'same' zero padding, built once per grid step.
        col = lax.broadcasted_iota(jnp.int32, (1, H), 1)
        at_lo = col == 0
        at_hi = col == H - 1

        def conv3(t, w3, b):
            # (3,1) 'same' conv along the lane axis as three accumulating matmuls
            # (no im2col concat): out = W0 @ t[h-1] + W1 @ t[h] + W2 @ t[h+1] + b.
            t_m1 = jnp.where(at_lo, 0.0, pltpu.roll(t, shift=1, axis=1))
            t_p1 = jnp.where(at_hi, 0.0, pltpu.roll(t, shift=H - 1, axis=1))
            acc = jnp.dot(w3[0], t_m1, preferred_element_type=jnp.float32)
            acc += jnp.dot(w3[1], t, preferred_element_type=jnp.float32)
            acc += jnp.dot(w3[2], t_p1, preferred_element_type=jnp.float32)
            return jnp.maximum(acc + b, 0.0)

        inv_n = 1.0 / float(mid * H)
        inv_c = 1.0 / float(mid)

        def body(bi, carry):
            x = x_ref[bi]                                        # (dim, H)

            # layer 1: q1/k1/v1 fused along the output-channel axis
            h1 = conv3(x, w1, b1)                                # (3*mid, H)
            q1 = h1[0:mid]
            k1 = h1[mid:2 * mid]
            v = h1[2 * mid:3 * mid]                              # stays live (no scratch)

            # layer 2: two independent convs (no block-diagonal fusion, no concat)
            q = conv3(q1, wq, bq)                                # (mid, H)
            k = conv3(k1, wk, bk)                                # (mid, H)

            # softmax over the channel (sublane) axis
            score = q * k
            m = jnp.max(score, axis=0, keepdims=True)
            e = jnp.exp(score - m)
            denom = jnp.sum(e, axis=0, keepdims=True)            # (1, H)
            # Review suggested approx=True (EUP slot); exact kept for the 1e-4 check.
            attn = e * pl.reciprocal(denom, approx=False)

            # LayerNorm over the (mid, H) slab: two-pass statistics, pre-centred
            # around the analytic softmax mean 1/mid so there is no E[x^2]-mu^2
            # cancellation when attn is near-uniform (previous mismatch source).
            sh = attn - inv_c
            mu_s = jnp.sum(sh) * inv_n                           # residual mean
            d = sh - mu_s                                        # attn - mean(attn)
            var = jnp.sum(d * d) * inv_n
            inv = lax.rsqrt(var + LN_EPS)
            attn_g = d * (gamma * inv) + beta                    # bn_w already folded in

            # gate values; bottleneck = channel-axis sum (bn_w folded) + bias; ReLU
            ctx = attn_g * v
            out = jnp.sum(ctx, axis=0, keepdims=True) + bnb      # (1, H)
            out_ref[bi] = jnp.maximum(out, 0.0)
            return carry

        lax.fori_loop(0, Bb, body, 0, unroll=True)

    return kernel


# ------------------------------------------------------------------ host-side packing

def _pack_params(p, dim, mid, H):
    """Pack conv weights/biases into one lane-dense slab (tap blocks at 8-row-aligned
    offsets, biases in one extra column) and LayerNorm affine (with the 1x1
    bottleneck weight folded in) + bn_b into a second slab: 2 parameter DMAs."""
    bias_col = max(dim, mid)
    R1 = 3 * mid
    rows = 3 * R1 + 6 * mid                                     # 15*mid

    def tap(w4, k):                                             # (Cout,Cin,3,1)->(Cout,Cin)
        return w4[:, :, k, 0]

    slab = jnp.zeros((rows, bias_col + 1), jnp.float32)
    for k in range(3):                                          # layer-1 q1/k1/v1 fused
        w1k = jnp.concatenate([tap(p["q1_w"], k), tap(p["k1_w"], k),
                               tap(p["v1_w"], k)], axis=0)      # (3*mid, dim)
        slab = slab.at[k * R1:(k + 1) * R1, 0:dim].set(w1k)
    slab = slab.at[0:R1, bias_col].set(
        jnp.concatenate([p["q1_b"], p["k1_b"], p["v1_b"]]))

    O2 = 3 * R1
    for k in range(3):
        slab = slab.at[O2 + k * mid:O2 + (k + 1) * mid, 0:mid].set(tap(p["q2_w"], k))
    slab = slab.at[O2:O2 + mid, bias_col].set(p["q2_b"])

    O3 = O2 + 3 * mid
    for k in range(3):
        slab = slab.at[O3 + k * mid:O3 + (k + 1) * mid, 0:mid].set(tap(p["k2_w"], k))
    slab = slab.at[O3:O3 + mid, bias_col].set(p["k2_b"])

    bn_w = p["bn_w"].reshape(mid)
    gamma = p["ln_g"][..., 0] * bn_w[:, None]                   # (mid, H)
    beta = p["ln_b"][..., 0] * bn_w[:, None]                    # (mid, H)
    bnb_row = jnp.full((1, H), p["bn_b"][0], jnp.float32)
    ln = jnp.concatenate([gamma, beta, bnb_row], axis=0)        # (2*mid+1, H)
    return slab, ln, bias_col


# --------------------------------------------------------------------------- wrapper

def _grid_plan(B):
    """Batches per grid step: one fat step on single-TC chips (v5e/v6e), otherwise
    keep >=2 'parallel' steps so both TensorCores of a dual-TC chip get work."""
    try:
        kind = jax.devices()[0].device_kind.lower()
    except Exception:
        kind = ""
    single_tc = any(s in kind for s in ("v5 lite", "v5e", "v6 lite", "v6e"))
    steps = 1 if single_tc else 2
    if B >= steps and B % steps == 0:
        return steps, B // steps
    return B, 1


def scaled_dot_product_attention(x4, p):
    """x4: (B, dim, H, 1) NCHW float32 input; returns (B, 1, H, 1)."""
    B, dim, H, _ = x4.shape
    mid = p["q1_w"].shape[0]
    x = x4[..., 0]                                              # (B, dim, H)

    wb_slab, ln_slab, bias_col = _pack_params(p, dim, mid, H)
    n_steps, Bb = _grid_plan(B)

    out = pl.pallas_call(
        _make_kernel(dim, mid, H, Bb, bias_col),
        out_shape=jax.ShapeDtypeStruct((B, 1, H), jnp.float32),
        grid=(n_steps,),
        in_specs=[
            pl.BlockSpec((Bb, dim, H), lambda i: (i, 0, 0)),    # Bb batches per step
            pl.BlockSpec(wb_slab.shape, lambda i: (0, 0)),      # packed conv weights+biases
            pl.BlockSpec(ln_slab.shape, lambda i: (0, 0)),      # gamma/beta (bn folded) + bn_b
        ],
        out_specs=pl.BlockSpec((Bb, 1, H), lambda i: (i, 0, 0)),
        compiler_params=pltpu.CompilerParams(dimension_semantics=("parallel",)),
    )(x, wb_slab, ln_slab)
    return out[..., None]                                       # (B, 1, H, 1)


# ----------------------------------------------------------------- params & reference

def init_params(key, dim, mid, H):
    ks = jax.random.split(key, 14)

    def cw(k, cout, cin, kh):
        fan_in = cin * kh
        return jax.random.uniform(k, (cout, cin, kh, 1), jnp.float32,
                                  -1.0, 1.0) / jnp.sqrt(float(fan_in))

    def cb(k, cout):
        return jax.random.uniform(k, (cout,), jnp.float32, -0.1, 0.1)

    return {
        "q1_w": cw(ks[0], mid, dim, 3), "q1_b": cb(ks[1], mid),
        "q2_w": cw(ks[2], mid, mid, 3), "q2_b": cb(ks[3], mid),
        "k1_w": cw(ks[4], mid, dim, 3), "k1_b": cb(ks[5], mid),
        "k2_w": cw(ks[6], mid, mid, 3), "k2_b": cb(ks[7], mid),
        "v1_w": cw(ks[8], mid, dim, 3), "v1_b": cb(ks[9], mid),
        "bn_w": cw(ks[10], 1, mid, 1),  "bn_b": cb(ks[11], 1),
        # Non-trivial LayerNorm affine params so the affine path is actually checked.
        "ln_g": 1.0 + 0.1 * jax.random.normal(ks[12], (mid, H, 1), jnp.float32),
        "ln_b": 0.1 * jax.random.normal(ks[13], (mid, H, 1), jnp.float32),
    }


def ref_forward(x4, p):
    """Pure-JAX reference matching the PyTorch forward (NCHW)."""
    def conv(x, w, b, pad):
        out = lax.conv_general_dilated(x, w, (1, 1), pad,
                                       dimension_numbers=("NCHW", "OIHW", "NCHW"))
        return out + b[None, :, None, None]

    relu = lambda t: jnp.maximum(t, 0.0)
    same = ((1, 1), (0, 0))

    q = relu(conv(x4, p["q1_w"], p["q1_b"], same))
    q = relu(conv(q, p["q2_w"], p["q2_b"], same))
    k = relu(conv(x4, p["k1_w"], p["k1_b"], same))
    k = relu(conv(k, p["k2_w"], p["k2_b"], same))
    v = relu(conv(x4, p["v1_w"], p["v1_b"], same))

    score = q * k
    attn = jax.nn.softmax(score, axis=1)
    mu = jnp.mean(attn, axis=(1, 2, 3), keepdims=True)
    var = jnp.mean((attn - mu) ** 2, axis=(1, 2, 3), keepdims=True)
    attn = (attn - mu) / jnp.sqrt(var + LN_EPS)
    attn = attn * p["ln_g"][None] + p["ln_b"][None]
    context = attn * v
    out = conv(context, p["bn_w"], p["bn_b"], ((0, 0), (0, 0)))
    return relu(out)


# --------------------------------------------------------------------------- main

if __name__ == "__main__":
    # H is fixed at 1024 by nn.LayerNorm([mid, 1024, 1]); dim/mid kept small.
    B, dim, mid, H = 2, 4, 8, 1024
    key = jax.random.PRNGKey(0)
    k_x, k_p = jax.random.split(key)

    x4 = jax.random.normal(k_x, (B, dim, H, 1), jnp.float32)    # NCHW input
    params = init_params(k_p, dim, mid, H)

    out = scaled_dot_product_attention(x4, params)
    out = jax.block_until_ready(out)

    ref = ref_forward(x4, params)
    assert out.shape == (B, 1, H, 1)
    max_err = float(jnp.max(jnp.abs(out - ref)))
    if max_err < 1e-4:
        print("KERNEL_OK")
    else:
        print(f"MISMATCH max_abs_err={max_err}")
</pallas_src>

<mosaic_0001>
module attributes {stable_mosaic.version = 11 : i64} {
  func.func @kernel(%arg0: i32, %arg1: memref<1x4x1024xf32, #tpu.memory_space<vmem>>, %arg2: memref<120x9xf32, #tpu.memory_space<vmem>>, %arg3: memref<17x1024xf32, #tpu.memory_space<vmem>>, %arg4: memref<1x1x1024xf32, #tpu.memory_space<vmem>>) attributes {dimension_semantics = [#tpu.dimension_semantics<parallel>], iteration_bounds = array<i64: 2>, scalar_prefetch = 0 : i64, scratch_operands = 0 : i64, tpu.core_type = #tpu.core_type<tc>, window_params = [{transform_indices = @transform_0, window_bounds = array<i64: 1, 4, 1024>}, {pipeline_mode = #tpu.pipeline_mode<synchronous>, transform_indices = @transform_1, window_bounds = array<i64: 120, 9>}, {pipeline_mode = #tpu.pipeline_mode<synchronous>, transform_indices = @transform_2, window_bounds = array<i64: 17, 1024>}, {transform_indices = @transform_3, window_bounds = array<i64: 1, 1, 1024>}]} {
    %c0 = arith.constant 0 : index
    %c0_0 = arith.constant 0 : index
    %0 = vector.load %arg2[%c0, %c0_0] : memref<120x9xf32, #tpu.memory_space<vmem>>, vector<24x4xf32>
    %c24 = arith.constant 24 : index
    %c0_1 = arith.constant 0 : index
    %1 = vector.load %arg2[%c24, %c0_1] : memref<120x9xf32, #tpu.memory_space<vmem>>, vector<24x4xf32>
    %c48 = arith.constant 48 : index
    %c0_2 = arith.constant 0 : index
    %2 = vector.load %arg2[%c48, %c0_2] : memref<120x9xf32, #tpu.memory_space<vmem>>, vector<24x4xf32>
    %c0_3 = arith.constant 0 : index
    %c8 = arith.constant 8 : index
    %3 = vector.load %arg2[%c0_3, %c8] : memref<120x9xf32, #tpu.memory_space<vmem>>, vector<24x1xf32>
    %c72 = arith.constant 72 : index
    %c0_4 = arith.constant 0 : index
    %4 = vector.load %arg2[%c72, %c0_4] : memref<120x9xf32, #tpu.memory_space<vmem>>, vector<8x8xf32>
    %c80 = arith.constant 80 : index
    %c0_5 = arith.constant 0 : index
    %5 = vector.load %arg2[%c80, %c0_5] : memref<120x9xf32, #tpu.memory_space<vmem>>, vector<8x8xf32>
    %c88 = arith.constant 88 : index
    %c0_6 = arith.constant 0 : index
    %6 = vector.load %arg2[%c88, %c0_6] : memref<120x9xf32, #tpu.memory_space<vmem>>, vector<8x8xf32>
    %c72_7 = arith.constant 72 : index
    %c8_8 = arith.constant 8 : index
    %7 = vector.load %arg2[%c72_7, %c8_8] : memref<120x9xf32, #tpu.memory_space<vmem>>, vector<8x1xf32>
    %c96 = arith.constant 96 : index
    %c0_9 = arith.constant 0 : index
    %8 = vector.load %arg2[%c96, %c0_9] : memref<120x9xf32, #tpu.memory_space<vmem>>, vector<8x8xf32>
    %c104 = arith.constant 104 : index
    %c0_10 = arith.constant 0 : index
    %9 = vector.load %arg2[%c104, %c0_10] : memref<120x9xf32, #tpu.memory_space<vmem>>, vector<8x8xf32>
    %c112 = arith.constant 112 : index
    %c0_11 = arith.constant 0 : index
    %10 = vector.load %arg2[%c112, %c0_11] : memref<120x9xf32, #tpu.memory_space<vmem>>, vector<8x8xf32>
    %c96_12 = arith.constant 96 : index
    %c8_13 = arith.constant 8 : index
    %11 = vector.load %arg2[%c96_12, %c8_13] : memref<120x9xf32, #tpu.memory_space<vmem>>, vector<8x1xf32>
    %c0_14 = arith.constant 0 : index
    %c0_15 = arith.constant 0 : index
    %12 = vector.load %arg3[%c0_14, %c0_15] : memref<17x1024xf32, #tpu.memory_space<vmem>>, vector<8x1024xf32>
    %c8_16 = arith.constant 8 : index
    %c0_17 = arith.constant 0 : index
    %13 = vector.load %arg3[%c8_16, %c0_17] : memref<17x1024xf32, #tpu.memory_space<vmem>>, vector<8x1024xf32>
    %c16 = arith.constant 16 : index
    %c0_18 = arith.constant 0 : index
    %14 = vector.load %arg3[%c16, %c0_18] : memref<17x1024xf32, #tpu.memory_space<vmem>>, vector<1x1024xf32>
    %15 = tpu.iota {dimensions = array<i32: 1>} : vector<1x1024xi32>
    %c0_i32 = arith.constant 0 : i32
    %16 = vector.broadcast %c0_i32 : i32 to vector<1x1024xi32>
    %17 = arith.cmpi eq, %15, %16 : vector<1x1024xi32>
    %c1023_i32 = arith.constant 1023 : i32
    %18 = vector.broadcast %c1023_i32 : i32 to vector<1x1024xi32>
    %19 = arith.cmpi eq, %15, %18 : vector<1x1024xi32>
    %c0_i32_19 = arith.constant 0 : i32
    %20 = arith.index_cast %c0_i32_19 : i32 to index
    %c0_20 = arith.constant 0 : index
    %c0_21 = arith.constant 0 : index
    %21 = vector.load %arg1[%20, %c0_20, %c0_21] : memref<1x4x1024xf32, #tpu.memory_space<vmem>>, vector<1x4x1024xf32>
    %22 = vector.shape_cast %21 : vector<1x4x1024xf32> to vector<4x1024xf32>
    %c1_i32 = arith.constant 1 : i32
    %23 = tpu.dynamic_rotate %22 by %c1_i32 dim 1 : vector<4x1024xf32>, i32 -> vector<4x1024xf32>
    %cst = arith.constant 0.000000e+00 : f32
    %24 = vector.shape_cast %17 : vector<1x1024xi1> to vector<1x1024xi1>
    %25 = vector.broadcast %24 : vector<1x1024xi1> to vector<4x1024xi1>
    %26 = vector.broadcast %cst : f32 to vector<4x1024xf32>
    %27 = arith.select %25, %26, %23 : vector<4x1024xi1>, vector<4x1024xf32>
    %c1023_i32_22 = arith.constant 1023 : i32
    %28 = tpu.dynamic_rotate %22 by %c1023_i32_22 dim 1 : vector<4x1024xf32>, i32 -> vector<4x1024xf32>
    %cst_23 = arith.constant 0.000000e+00 : f32
    %29 = vector.shape_cast %19 : vector<1x1024xi1> to vector<1x1024xi1>
    %30 = vector.broadcast %29 : vector<1x1024xi1> to vector<4x1024xi1>
    %31 = vector.broadcast %cst_23 : f32 to vector<4x1024xf32>
    %32 = arith.select %30, %31, %28 : vector<4x1024xi1>, vector<4x1024xf32>
    %cst_24 = arith.constant dense<0.000000e+00> : vector<24x1024xf32>
    %33 = tpu.matmul %0, %27, %cst_24 {dimension_numbers = #tpu.dot_dimension_numbers<[1], [0], [0], [1], [0, 0, 1, 1], [], []>} : vector<24x4xf32>, vector<4x1024xf32>, vector<24x1024xf32> -> vector<24x1024xf32>
    %cst_25 = arith.constant dense<0.000000e+00> : vector<24x1024xf32>
    %34 = tpu.matmul %1, %22, %cst_25 {dimension_numbers = #tpu.dot_dimension_numbers<[1], [0], [0], [1], [0, 0, 1, 1], [], []>} : vector<24x4xf32>, vector<4x1024xf32>, vector<24x1024xf32> -> vector<24x1024xf32>
    %35 = arith.addf %33, %34 : vector<24x1024xf32>
    %cst_26 = arith.constant dense<0.000000e+00> : vector<24x1024xf32>
    %36 = tpu.matmul %2, %32, %cst_26 {dimension_numbers = #tpu.dot_dimension_numbers<[1], [0], [0], [1], [0, 0, 1, 1], [], []>} : vector<24x4xf32>, vector<4x1024xf32>, vector<24x1024xf32> -> vector<24x1024xf32>
    %37 = arith.addf %35, %36 : vector<24x1024xf32>
    %38 = vector.broadcast %3 : vector<24x1xf32> to vector<24x1024xf32>
    %39 = arith.addf %37, %38 : vector<24x1024xf32>
    %cst_27 = arith.constant 0.000000e+00 : f32
    %40 = vector.broadcast %cst_27 : f32 to vector<24x1024xf32>
    %41 = arith.maximumf %39, %40 : vector<24x1024xf32>
    %42 = vector.extract_strided_slice %41 {offsets = [0, 0], sizes = [8, 1024], strides = [1, 1]} : vector<24x1024xf32> to vector<8x1024xf32>
    %43 = vector.extract_strided_slice %41 {offsets = [8, 0], sizes = [8, 1024], strides = [1, 1]} : vector<24x1024xf32> to vector<8x1024xf32>
    %44 = vector.extract_strided_slice %41 {offsets = [16, 0], sizes = [8, 1024], strides = [1, 1]} : vector<24x1024xf32> to vector<8x1024xf32>
    %c1_i32_28 = arith.constant 1 : i32
    %45 = tpu.dynamic_rotate %42 by %c1_i32_28 dim 1 : vector<8x1024xf32>, i32 -> vector<8x1024xf32>
    %cst_29 = arith.constant 0.000000e+00 : f32
    %46 = vector.shape_cast %17 : vector<1x1024xi1> to vector<1x1024xi1>
    %47 = vector.broadcast %46 : vector<1x1024xi1> to vector<8x1024xi1>
    %48 = vector.broadcast %cst_29 : f32 to vector<8x1024xf32>
    %49 = arith.select %47, %48, %45 : vector<8x1024xi1>, vector<8x1024xf32>
    %c1023_i32_30 = arith.constant 1023 : i32
    %50 = tpu.dynamic_rotate %42 by %c1023_i32_30 dim 1 : vector<8x1024xf32>, i32 -> vector<8x1024xf32>
    %cst_31 = arith.constant 0.000000e+00 : f32
    %51 = vector.shape_cast %19 : vector<1x1024xi1> to vector<1x1024xi1>
    %52 = vector.broadcast %51 : vector<1x1024xi1> to vector<8x1024xi1>
    %53 = vector.broadcast %cst_31 : f32 to vector<8x1024xf32>
    %54 = arith.select %52, %53, %50 : vector<8x1024xi1>, vector<8x1024xf32>
    %cst_32 = arith.constant dense<0.000000e+00> : vector<8x1024xf32>
    %55 = tpu.matmul %4, %49, %cst_32 {dimension_numbers = #tpu.dot_dimension_numbers<[1], [0], [0], [1], [0, 0, 1, 1], [], []>} : vector<8x8xf32>, vector<8x1024xf32>, vector<8x1024xf32> -> vector<8x1024xf32>
    %cst_33 = arith.constant dense<0.000000e+00> : vector<8x1024xf32>
    %56 = tpu.matmul %5, %42, %cst_33 {dimension_numbers = #tpu.dot_dimension_numbers<[1], [0], [0], [1], [0, 0, 1, 1], [], []>} : vector<8x8xf32>, vector<8x1024xf32>, vector<8x1024xf32> -> vector<8x1024xf32>
    %57 = arith.addf %55, %56 : vector<8x1024xf32>
    %cst_34 = arith.constant dense<0.000000e+00> : vector<8x1024xf32>
    %58 = tpu.matmul %6, %54, %cst_34 {dimension_numbers = #tpu.dot_dimension_numbers<[1], [0], [0], [1], [0, 0, 1, 1], [], []>} : vector<8x8xf32>, vector<8x1024xf32>, vector<8x1024xf32> -> vector<8x1024xf32>
    %59 = arith.addf %57, %58 : vector<8x1024xf32>
    %60 = vector.broadcast %7 : vector<8x1xf32> to vector<8x1024xf32>
    %61 = arith.addf %59, %60 : vector<8x1024xf32>
    %cst_35 = arith.constant 0.000000e+00 : f32
    %62 = vector.broadcast %cst_35 : f32 to vector<8x1024xf32>
    %63 = arith.maximumf %61, %62 : vector<8x1024xf32>
    %c1_i32_36 = arith.constant 1 : i32
    %64 = tpu.dynamic_rotate %43 by %c1_i32_36 dim 1 : vector<8x1024xf32>, i32 -> vector<8x1024xf32>
    %cst_37 = arith.constant 0.000000e+00 : f32
    %65 = vector.shape_cast %17 : vector<1x1024xi1> to vector<1x1024xi1>
    %66 = vector.broadcast %65 : vector<1x1024xi1> to vector<8x1024xi1>
    %67 = vector.broadcast %cst_37 : f32 to vector<8x1024xf32>
    %68 = arith.select %66, %67, %64 : vector<8x1024xi1>, vector<8x1024xf32>
    %c1023_i32_38 = arith.constant 1023 : i32
    %69 = tpu.dynamic_rotate %43 by %c1023_i32_38 dim 1 : vector<8x1024xf32>, i32 -> vector<8x1024xf32>
    %cst_39 = arith.constant 0.000000e+00 : f32
    %70 = vector.shape_cast %19 : vector<1x1024xi1> to vector<1x1024xi1>
    %71 = vector.broadcast %70 : vector<1x1024xi1> to vector<8x1024xi1>
    %72 = vector.broadcast %cst_39 : f32 to vector<8x1024xf32>
    %73 = arith.select %71, %72, %69 : vector<8x1024xi1>, vector<8x1024xf32>
    %cst_40 = arith.constant dense<0.000000e+00> : vector<8x1024xf32>
    %74 = tpu.matmul %8, %68, %cst_40 {dimension_numbers = #tpu.dot_dimension_numbers<[1], [0], [0], [1], [0, 0, 1, 1], [], []>} : vector<8x8xf32>, vector<8x1024xf32>, vector<8x1024xf32> -> vector<8x1024xf32>
    %cst_41 = arith.constant dense<0.000000e+00> : vector<8x1024xf32>
    %75 = tpu.matmul %9, %43, %cst_41 {dimension_numbers = #tpu.dot_dimension_numbers<[1], [0], [0], [1], [0, 0, 1, 1], [], []>} : vector<8x8xf32>, vector<8x1024xf32>, vector<8x1024xf32> -> vector<8x1024xf32>
    %76 = arith.addf %74, %75 : vector<8x1024xf32>
    %cst_42 = arith.constant dense<0.000000e+00> : vector<8x1024xf32>
    %77 = tpu.matmul %10, %73, %cst_42 {dimension_numbers = #tpu.dot_dimension_numbers<[1], [0], [0], [1], [0, 0, 1, 1], [], []>} : vector<8x8xf32>, vector<8x1024xf32>, vector<8x1024xf32> -> vector<8x1024xf32>
    %78 = arith.addf %76, %77 : vector<8x1024xf32>
    %79 = vector.broadcast %11 : vector<8x1xf32> to vector<8x1024xf32>
    %80 = arith.addf %78, %79 : vector<8x1024xf32>
    %cst_43 = arith.constant 0.000000e+00 : f32
    %81 = vector.broadcast %cst_43 : f32 to vector<8x1024xf32>
    %82 = arith.maximumf %80, %81 : vector<8x1024xf32>
    %83 = arith.mulf %63, %82 : vector<8x1024xf32>
    %cst_44 = arith.constant dense<0xFF800000> : vector<1024xf32>
    %84 = vector.multi_reduction <maximumf>, %83, %cst_44 [0] : vector<8x1024xf32> to vector<1024xf32>
    %85 = vector.shape_cast %84 : vector<1024xf32> to vector<1x1024xf32>
    %86 = vector.broadcast %85 : vector<1x1024xf32> to vector<8x1024xf32>
    %87 = arith.subf %83, %86 : vector<8x1024xf32>
    %88 = math.exp %87 : vector<8x1024xf32>
    %cst_45 = arith.constant dense<0.000000e+00> : vector<1024xf32>
    %89 = vector.multi_reduction <add>, %88, %cst_45 [0] : vector<8x1024xf32> to vector<1024xf32>
    %90 = vector.shape_cast %89 : vector<1024xf32> to vector<1x1024xf32>
    %91 = tpu.reciprocal %90 : vector<1x1024xf32> -> vector<1x1024xf32>
    %92 = vector.broadcast %91 : vector<1x1024xf32> to vector<8x1024xf32>
    %93 = arith.mulf %88, %92 : vector<8x1024xf32>
    %cst_46 = arith.constant 1.250000e-01 : f32
    %94 = vector.broadcast %cst_46 : f32 to vector<8x1024xf32>
    %95 = arith.subf %93, %94 : vector<8x1024xf32>
    %96 = vector.shape_cast %95 : vector<8x1024xf32> to vector<1x8x1024xf32>
    %cst_47 = arith.constant dense<0.000000e+00> : vector<1xf32>
    %97 = vector.multi_reduction <add>, %96, %cst_47 [1, 2] : vector<1x8x1024xf32> to vector<1xf32>
    %98 = vector.shape_cast %97 : vector<1xf32> to vector<1x1x1xf32>
    %99 = vector.extract %98[0, 0, 0] : f32 from vector<1x1x1xf32>
    %cst_48 = arith.constant 1.22070313E-4 : f32
    %100 = arith.mulf %99, %cst_48 : f32
    %101 = vector.broadcast %100 : f32 to vector<8x1024xf32>
    %102 = arith.subf %95, %101 : vector<8x1024xf32>
    %103 = arith.mulf %102, %102 : vector<8x1024xf32>
    %104 = vector.shape_cast %103 : vector<8x1024xf32> to vector<1x8x1024xf32>
    %cst_49 = arith.constant dense<0.000000e+00> : vector<1xf32>
    %105 = vector.multi_reduction <add>, %104, %cst_49 [1, 2] : vector<1x8x1024xf32> to vector<1xf32>
    %106 = vector.shape_cast %105 : vector<1xf32> to vector<1x1x1xf32>
    %107 = vector.extract %106[0, 0, 0] : f32 from vector<1x1x1xf32>
    %cst_50 = arith.constant 1.22070313E-4 : f32
    %108 = arith.mulf %107, %cst_50 : f32
    %cst_51 = arith.constant 9.99999974E-6 : f32
    %109 = arith.addf %108, %cst_51 : f32
    %110 = math.rsqrt %109 : f32
    %111 = vector.broadcast %110 : f32 to vector<8x1024xf32>
    %112 = arith.mulf %12, %111 : vector<8x1024xf32>
    %113 = arith.mulf %102, %112 : vector<8x1024xf32>
    %114 = arith.addf %113, %13 : vector<8x1024xf32>
    %115 = arith.mulf %114, %44 : vector<8x1024xf32>
    %cst_52 = arith.constant dense<0.000000e+00> : vector<1024xf32>
    %116 = vector.multi_reduction <add>, %115, %cst_52 [0] : vector<8x1024xf32> to vector<1024xf32>
    %117 = vector.shape_cast %116 : vector<1024xf32> to vector<1x1024xf32>
    %118 = arith.addf %117, %14 : vector<1x1024xf32>
    %cst_53 = arith.constant 0.000000e+00 : f32
    %119 = vector.broadcast %cst_53 : f32 to vector<1x1024xf32>
    %120 = arith.maximumf %118, %119 : vector<1x1024xf32>
    %121 = arith.index_cast %c0_i32_19 : i32 to index
    %c0_54 = arith.constant 0 : index
    %c0_55 = arith.constant 0 : index
    %122 = vector.load %arg4[%121, %c0_54, %c0_55] : memref<1x1x1024xf32, #tpu.memory_space<vmem>>, vector<1x1x1024xf32>
    %123 = vector.shape_cast %122 : vector<1x1x1024xf32> to vector<1x1024xf32>
    %124 = vector.shape_cast %120 : vector<1x1024xf32> to vector<1x1x1024xf32>
    tpu.vector_store %arg4[%121, %c0_54, %c0_55], %124 {strides = array<i32>} : memref<1x1x1024xf32, #tpu.memory_space<vmem>>, vector<1x1x1024xf32>,
    %c1_i32_56 = arith.constant 1 : i32
    return
  }
  func.func @transform_0(%arg0: i32) -> (i32, i32, i32) {
    %c0_i32 = arith.constant 0 : i32
    %c0_i32_0 = arith.constant 0 : i32
    %c0_i32_1 = arith.constant 0 : i32
    return %arg0, %c0_i32, %c0_i32_0 : i32, i32, i32
  }
  func.func @transform_1(%arg0: i32) -> (i32, i32) {
    %c0_i32 = arith.constant 0 : i32
    %c0_i32_0 = arith.constant 0 : i32
    %c0_i32_1 = arith.constant 0 : i32
    return %c0_i32, %c0_i32_0 : i32, i32
  }
  func.func @transform_2(%arg0: i32) -> (i32, i32) {
    %c0_i32 = arith.constant 0 : i32
    %c0_i32_0 = arith.constant 0 : i32
    %c0_i32_1 = arith.constant 0 : i32
    return %c0_i32, %c0_i32_0 : i32, i32
  }
  func.func @transform_3(%arg0: i32) -> (i32, i32, i32) {
    %c0_i32 = arith.constant 0 : i32
    %c0_i32_0 = arith.constant 0 : i32
    %c0_i32_1 = arith.constant 0 : i32
    return %arg0, %c0_i32, %c0_i32_0 : i32, i32, i32
  }
}

</mosaic_0001>

<bundles_post_ra>
// kernel: tpu_custom_call.1
= control target key start
LH: loop header
LB: loop body
LE: loop exit
PB: predicated region body
PF: predicated region fallthrough
CT: control target
= control target key end

     0   :  { %8 = vsyncpa [#allocation3], 0  ;;  %s4420_s0 = inlined_call_operand.vmem [shape: f32[2,4,1024], index: 0, kind: input, shape index: {}]   ;;  %s4421_s1 = inlined_call_operand.vmem [shape: f32[120,9], index: 1, kind: input, shape index: {}]   ;;  %s4422_s2 = inlined_call_operand.hbm [shape: f32[17,1024], index: 2, kind: input, shape index: {}]   ;;  %s4423_s3 = inlined_call_operand.hbm [shape: f32[2,1,1024], index: 3, kind: output, shape index: {}]  }
   0x1   :  { %9 = vsyncpa [#allocation4], 0 }
   0x2   :  { %11 = vsyncpa [#allocation4 + $0x1], 0  ;;  %s3383_s12 = smov 0   ;;  %s3385_s13 = smov 0  }
   0x3   :  { %s3387_s14 = smov 0   ;;  %s3389_s15 = smov 0  }
   0x4 LB: > { %s3404_s16 = sadd.s32 4294967295, %s3355_s15   ;;  %s2928_s17 = sadd.s32 4294967294, %s3355_s15   ;;  %s3355_s15 = sphi %s3389_s15, %s4461_s15   ;;  %s3351_s14 = sphi %s3387_s14, %s4460_s14   ;;  %s3347_s13 = sphi %s3385_s13, %s4459_s13   ;;  %s3343_s12 = sphi %s3383_s12, %s4458_s12  }
   0x5   : > { %s3408_s18 = sadd.s32 1, %s3355_s15   ;;  %s92_s19 = sadd.s32 1, %s3351_s14 }
   0x6   : > { %s89_s20 = ssub.s32 %s3355_s15, %s3408_s18  ;;  %p102_p0 = scmp.ne.s32.totalorder %s3351_s14, %s3347_s13 }
   0x7   : > { %p90_p1 = scmp.eq.s32.totalorder %s89_s20, 0  ;;  %p103_p2 = scmp.eq.s32.totalorder %s3404_s16, 1 }
   0x8   : > { %p108_p3 = scmp.ne.s32.totalorder %s3347_s13, %s3343_s12  ;;  %p109_p4 = scmp.eq.s32.totalorder %s2928_s17, 1 }
   0x9   : > { %s3419_s21 = scalar_select %p90_p1, %s3351_s14, %s92_s19  }
   0xa   : > { %p3421_p5 = por %p103_p2, %p102_p0  ;;  %p3425_p6 = por %p109_p4, %p108_p3 }
   0xb   : > { %p2929_p7 = scmp.ge.s32.totalorder %s3355_s15, 1  ;;  %p116_p8 = scmp.lt.s32.totalorder %s3355_s15, 3 }
   0xc   : > { %p3122_p9 = scmp.eq.s32.totalorder %s3404_s16, 0  ;;  %s130_s26 = sshll.u32 %s4422_s2, 4  ;;  %s131_s26 = int_to_ptr.hbm [resolvable:$true] %s130_s26 }
   0xd   : > { %p117_p10 = pnand %p2929_p7, %p116_p8  ;;  %s3357_s27 = smov [#allocation2]  }
   0xe   : > { %s132_s28 = sshll.u32 %s3357_s27, 4  ;;  %s3358_s29 = smov 1024   ;;  %s133_s28 = int_to_ptr.vmem [resolvable:$true] %s132_s28 }
   0xf   : > { %p3114_p11 = pneg %p117_p10  ;;  %s3359_s30 = smov 64  }
  0x10   : > { %156 = sbr.rel (%p117_p10) target bundleno = 1306 (0x51a), region = 32 }
  0x11   : > { %p3115_p12 = pnand %p3122_p9, %p3114_p11 }
  0x13   : > { %3117 = dma.hbm_to_vmem [thread:$0]  (!%p3115_p12), %s131_s26, 3072, %s133_s28, [#allocation3], %s3358_s29, %s3358_s29, %s3359_s30  }
  0x15   : > { %3334 = dma.done.wait (%p3122_p9), [#allocation3], 3072  }
  0x16   : > { %3336 = vsyncadd (%p3122_p9), [#allocation3], 4294964224  ;;  %p181_p13 = scmp.lt.s32.totalorder %s3404_s16, 1  ;;  %s3360_s9 = smov 1   ;;  %vm423_vm0 = vcmask 1043456   ;;  %v189_v20 = vld [vmem:[%s4421_s1 + $0x18] sm:$0xff]  ;;  %v221_v31 = vlaneseq }
  0x17   : > { %vm413_vm1 = vcmask 31744   ;;  %s3361_s17 = smov 127   ;;  %v190_v27 = vld [vmem:[%s4421_s1 + $0x20] sm:$0xff]  ;;  %v191_v30 = vld [vmem:[%s4421_s1 + $0x28] sm:$0xff]  ;;  %v3549_v51 = vld [vmem:[%s4421_s1 + $0x10] sm:$0xff]  ;;  %vm1278_vm6 = vcmask 64512  }
  0x18   : > { %s182_s4 = scalar_select %p181_p13, %s3404_s16, 1  ;;  %v3503_v32 = vand.u32 127, %v221_v31  ;;  %v3509_v36 = vld [vmem:[%s4421_s1] sm:$0xff]  ;;  %v3529_v45 = vld [vmem:[%s4421_s1 + $0x8] sm:$0xff] }
  0x19   : > { %s178_s19 = sand.u32 1, %s3347_s13   ;;  %s3098_s24 = sshll.u32 %s3404_s16, 3 }
  0x1a   : > { %s3101_s5 = sshll.u32 %s182_s4, 5  ;;  %vm293_vm2 = vcmp.lt.s32.totalorder %v3503_v32, 1  ;;  %vm230_vm3 = vcmp.eq.s32.totalorder %v3503_v32, 0  ;;  %vm365_vm4 = vcmp.lt.s32.totalorder %v3503_v32, 127  ;;  %v3580_v60 = vadd.s32 896, %v3503_v32  ;;  %s4361_s20 = sshll.u32 %s178_s19, 3 }
  0x1b   : > { %s185_s8 = scalar_lea.vmem %s4420_s0, %s3101_s5  ;;  %vm3826_vm7 = vmneg %vm230_vm3  ;;  %s180_s26 = scalar_lea.vmem [#allocation5], %s4361_s20 }
  0x1c   : > { %v247_v0 = vld [vmem:[%s185_s8 + $0x8] sm:$0xff]  ;;  %v246_v1 = vld [vmem:[%s185_s8] sm:$0xff]  ;;  %v249_v2 = vld [vmem:[%s185_s8 + $0x18] sm:$0xff]  ;;  %vm245_vm5 = vcmp.eq.s32.totalorder %v3580_v60, 1023  ;;  %s2854_s27 = sshll.u32 %s180_s26, 4  ;;  %s2855_s27 = int_to_ptr.vmem [resolvable:$true] %s2854_s27 }
  0x1d   : > { %256 = vst [vmem:[#allocation1 + $0x10] ss:$2 sm:$0xff] %v247_v0  ;;  %v248_v3 = vld [vmem:[%s185_s8 + $0x10] sm:$0xff]  ;;  %vm3943_vm8 = vmneg %vm245_vm5 }
  0x1e   : > { %254 = vst [vmem:[#allocation1] ss:$2 sm:$0xff] %v246_v1 }
  0x1f   : > { %260 = vst [vmem:[#allocation1 + $0x30] ss:$2 sm:$0xff] %v249_v2 }
  0x20   : > { %258 = vst [vmem:[#allocation1 + $0x20] ss:$2 sm:$0xff] %v248_v3 }
  0x24   : > { %v263_v4 = vld.sshfl [vmem:[#allocation1 + $0x10] sm:$0xff pattern:$0x75316420]  ;;  %v264_v5 = vld.sshfl [vmem:[#allocation1 + $0x18] sm:$0xff pattern:$0x75316420] }
  0x25   : > { %281 = vrot.lane.b32.xlu0 %v263_v4, %s3360_s9  ;;  %v262_v6 = vld.sshfl [vmem:[#allocation1 + $0x8] sm:$0xff pattern:$0x75316420]  ;;  %328 = vst [vmem:[#allocation1 + $0x10] ss:$2 sm:$0xff] %v247_v0 }
  0x26   : > { %279 = vrot.lane.b32.xlu1 %v262_v6, %s3360_s9  ;;  %v261_v7 = vld.sshfl [vmem:[#allocation1] sm:$0xff pattern:$0x75316420]  ;;  %v268_v8 = vld.sshfl [vmem:[#allocation1 + $0x38] sm:$0xff pattern:$0x75316420] }
  0x27   : > { %326 = vst [vmem:[#allocation1] ss:$2 sm:$0xff] %v246_v1  ;;  %291 = vrot.lane.b32.xlu2 %v268_v8, %s3360_s9  ;;  %v266_v9 = vld.sshfl [vmem:[#allocation1 + $0x28] sm:$0xff pattern:$0x75316420]  ;;  %v192_v8 = vld [vmem:[%s4421_s1 + $0x30] sm:$0xff] }
  0x28   : > { %v267_v10 = vld.sshfl [vmem:[#allocation1 + $0x30] sm:$0xff pattern:$0x75316420]  ;;  %v265_v11 = vld.sshfl [vmem:[#allocation1 + $0x20] sm:$0xff pattern:$0x75316420] }
  0x29   : > { %332 = vst [vmem:[#allocation1 + $0x30] ss:$2 sm:$0xff] %v249_v2 }
  0x2a   : > { %330 = vst [vmem:[#allocation1 + $0x20] ss:$2 sm:$0xff] %v248_v3 }
  0x2c   : > { %v335_v12 = vld.sshfl [vmem:[#allocation1 + $0x10] sm:$0xff pattern:$0x75316420]  ;;  %v336_v13 = vld.sshfl [vmem:[#allocation1 + $0x18] sm:$0xff pattern:$0x75316420] }
  0x2d   : > { %283 = vrot.lane.b32.xlu0 %v264_v5, %s3360_s9  ;;  %400 = vst [vmem:[#allocation1 + $0x10] ss:$2 sm:$0xff] %v247_v0 }
  0x2e   : > { %277 = vrot.lane.b32.xlu1 %v261_v7, %s3360_s9  ;;  %v334_v15 = vld.sshfl [vmem:[#allocation1 + $0x8] sm:$0xff pattern:$0x75316420]  ;;  %v333_v19 = vld.sshfl [vmem:[#allocation1] sm:$0xff pattern:$0x75316420] }
  0x2f   : > { %289 = vrot.lane.b32.xlu2 %v267_v10, %s3360_s9  ;;  %398 = vst [vmem:[#allocation1] ss:$2 sm:$0xff] %v246_v1  ;;  %v194_v10 = vld [vmem:[%s4421_s1 + $0x40] sm:$0xff] }
  0x30   : > { %v339_v14 = vld.sshfl [vmem:[#allocation1 + $0x30] sm:$0xff pattern:$0x75316420]  ;;  %v340_v18 = vld.sshfl [vmem:[#allocation1 + $0x38] sm:$0xff pattern:$0x75316420] }
  0x31   : > { %v337_v16 = vld.sshfl [vmem:[#allocation1 + $0x20] sm:$0xff pattern:$0x75316420]  ;;  %v338_v17 = vld.sshfl [vmem:[#allocation1 + $0x28] sm:$0xff pattern:$0x75316420] }
  0x32   : > { %402 = vst [vmem:[#allocation1 + $0x20] ss:$2 sm:$0xff] %v248_v3  ;;  %v3362_v3 = vmov 8  }
  0x33   : > { %404 = vst [vmem:[#allocation1 + $0x30] ss:$2 sm:$0xff] %v249_v2  ;;  %3163 = vset.pattern.permute.xlu1 %v3362_v3  ;;  %3164 = vset.pattern.permute.xlu0 %v3362_v3 }
  0x34   : > { %v407_v21 = vld.sshfl [vmem:[#allocation1 + $0x10] sm:$0xff pattern:$0x75316420]  ;;  %v408_v22 = vld.sshfl [vmem:[#allocation1 + $0x18] sm:$0xff pattern:$0x75316420] }
  0x35   : > { %287 = vrot.lane.b32.xlu0 %v266_v9, %s3360_s9  ;;  %2945 = vmatpush.msk.msra.mxu2 %vm423_vm0, %v407_v21  ;;  %v193_v9 = vld [vmem:[%s4421_s1 + $0x38] sm:$0xff] }
  0x36   : > { %285 = vrot.lane.b32.xlu1 %v265_v11, %s3360_s9  ;;  %2946 = vmatmul.msk.f32.vlgmr.msra.gmra.mxu2 %vm413_vm1, %v189_v20  ;;  %v406_v25 = vld.sshfl [vmem:[#allocation1 + $0x8] sm:$0xff pattern:$0x75316420]  ;;  %v405_v26 = vld.sshfl [vmem:[#allocation1] sm:$0xff pattern:$0x75316420] }
  0x37   : > { %355 = vrot.lane.b32.xlu2 %v336_v13, %s3361_s17  ;;  %2949 = vmatpush.msk.msra.mxu3 %vm423_vm0, %v408_v22 }
  0x38   : > { %2950 = vmatmul.msk.f32.vlgmr.msra.gmra.mxu3 %vm413_vm1, %v189_v20  ;;  %2941 = vmatpush.msk.msra.mxu1 %vm423_vm0, %v406_v25 }
  0x39   : > { %2937 = vmatpush.msk.msra.mxu0 %vm423_vm0, %v405_v26  ;;  %2942 = vmatmul.msk.f32.vlgmr.msra.gmra.mxu1 %vm413_vm1, %v189_v20  ;;  %v410_v28 = vld.sshfl [vmem:[#allocation1 + $0x28] sm:$0xff pattern:$0x75316420]  ;;  %v409_v29 = vld.sshfl [vmem:[#allocation1 + $0x20] sm:$0xff pattern:$0x75316420] }
  0x3a   : > { %v411_v23 = vld.sshfl [vmem:[#allocation1 + $0x30] sm:$0xff pattern:$0x75316420]  ;;  %v412_v24 = vld.sshfl [vmem:[#allocation1 + $0x38] sm:$0xff pattern:$0x75316420]  ;;  %2938 = vmatmul.msk.f32.vlgmr.msra.gmra.mxu0 %vm413_vm1, %v189_v20  ;;  %2957 = vmatpush.msk.msrb.mxu1 %vm423_vm0, %v410_v28 }
  0x3b   : > { %2961 = vmatpush.msk.msrb.mxu2 %vm423_vm0, %v411_v23  ;;  %2965 = vmatpush.msk.msrb.mxu3 %vm423_vm0, %v412_v24 }
  0x3c   : > { %2953 = vmatpush.msk.msrb.mxu0 %vm423_vm0, %v409_v29 }
  0x3d   : > { %357 = vrot.lane.b32.xlu0 %v337_v16, %s3361_s17 }
  0x3e   : > { %353 = vrot.lane.b32.xlu1 %v335_v12, %s3361_s17  ;;  %2947 = vmatmul.msk.f32.gmra.mxu2 %vm413_vm1, %v190_v27 }
  0x3f   : > { %351 = vrot.lane.b32.xlu2 %v334_v15, %s3361_s17 }
  0x40   : > { %2951 = vmatmul.msk.f32.gmra.mxu3 %vm413_vm1, %v190_v27 }
  0x41   : > { %2943 = vmatmul.msk.f32.gmra.mxu1 %vm413_vm1, %v190_v27 }
  0x42   : > { %2939 = vmatmul.msk.f32.gmra.mxu0 %vm413_vm1, %v190_v27 }
  0x45   : > { %349 = vrot.lane.b32.xlu0 %v333_v19, %s3361_s17 }
  0x46   : > { %363 = vrot.lane.b32.xlu1 %v340_v18, %s3361_s17  ;;  %2948 = vmatmul.msk.f32.gmra.mxu2 %vm413_vm1, %v191_v30 }
  0x47   : > { %361 = vrot.lane.b32.xlu2 %v339_v14, %s3361_s17 }
  0x48   : > { %2952 = vmatmul.msk.f32.gmra.mxu3 %vm413_vm1, %v191_v30 }
  0x49   : > { %2944 = vmatmul.msk.f32.gmra.mxu1 %vm413_vm1, %v191_v30 }
  0x4a   : > { %2940 = vmatmul.msk.f32.gmra.mxu0 %vm413_vm1, %v191_v30 }
  0x4d   : > { %359 = vrot.lane.b32.xlu0 %v338_v17, %s3361_s17 }
  0x4e   : > { %2962 = vmatmul.msk.f32.vlgmr.msrb.gmra.mxu2 %vm413_vm1, %v189_v20  ;;  %1155 = vperm.xlu1 %3163, %v3509_v36  }
  0x50   : > { %2966 = vmatmul.msk.f32.vlgmr.msrb.gmra.mxu3 %vm413_vm1, %v189_v20 }
  0x51   : > { %2958 = vmatmul.msk.f32.vlgmr.msrb.gmra.mxu1 %vm413_vm1, %v189_v20 }
  0x52   : > { %2954 = vmatmul.msk.f32.vlgmr.msrb.gmra.mxu0 %vm413_vm1, %v189_v20 }
  0x56   : > { %2963 = vmatmul.msk.f32.gmra.mxu2 %vm413_vm1, %v190_v27 }
  0x58   : > { %2967 = vmatmul.msk.f32.gmra.mxu3 %vm413_vm1, %v190_v27 }
  0x59   : > { %2959 = vmatmul.msk.f32.gmra.mxu1 %vm413_vm1, %v190_v27 }
  0x5a   : > { %2955 = vmatmul.msk.f32.gmra.mxu0 %vm413_vm1, %v190_v27 }
  0x5e   : > { %2964 = vmatmul.msk.f32.gmra.mxu2 %vm413_vm1, %v191_v30 }
  0x60   : > { %2968 = vmatmul.msk.f32.gmra.mxu3 %vm413_vm1, %v191_v30 }
  0x61   : > { %2960 = vmatmul.msk.f32.gmra.mxu1 %vm413_vm1, %v191_v30 }
  0x62   : > { %2956 = vmatmul.msk.f32.gmra.mxu0 %vm413_vm1, %v191_v30 }
  0x81   : > { %v292_v33 = vpop.permute.xlu2 %291 }
  0x89   : > { %v290_v38 = vpop.permute.xlu2 %289 }
  0x8a   : > { %v294_v42 = vsel %vm293_vm2, %v290_v38, %v292_v33 }
  0x91   : > { %v356_v47 = vpop.permute.xlu2 %355 }
  0x97   : > { %v282_v34 = vpop.permute.xlu0 %281 }
  0x98   : > { %v280_v35 = vpop.permute.xlu1 %279 }
  0x99   : > { %v299_v37 = vsel %vm293_vm2, %v280_v35, %v282_v34  ;;  %v352_v57 = vpop.permute.xlu2 %351 }
  0x9a   : > { %2977 = vmatpush.msk.msra.mxu2 %vm423_vm0, %v299_v37 }
  0x9b   : > { %2978 = vmatmul.msk.f32.vlgmr.msra.gmra.mxu2 %vm413_vm1, %v3509_v36 }
  0x9f   : > { %v284_v39 = vpop.permute.xlu0 %283 }
  0xa0   : > { %v298_v40 = vsel %vm293_vm2, %v282_v34, %v284_v39  ;;  %v278_v41 = vpop.permute.xlu1 %277 }
  0xa1   : > { %v300_v43 = vsel %vm293_vm2, %v278_v41, %v280_v35  ;;  %v301_v44 = vsel %vm293_vm2, %v292_v33, %v278_v41  ;;  %2981 = vmatpush.msk.msra.mxu3 %vm423_vm0, %v298_v40  ;;  %v362_v2 = vpop.permute.xlu2 %361 }
  0xa2   : > { %v318_v46 = vsel %vm230_vm3, 0.0, %v301_v44  ;;  %2973 = vmatpush.msk.msra.mxu1 %vm423_vm0, %v300_v43  ;;  %2982 = vmatmul.msk.f32.vlgmr.msra.gmra.mxu3 %vm413_vm1, %v3509_v36 }
  0xa3   : > { %2969 = vmatpush.msk.msra.mxu0 %vm423_vm0, %v318_v46  ;;  %2974 = vmatmul.msk.f32.vlgmr.msra.gmra.mxu1 %vm413_vm1, %v3509_v36 }
  0xa4   : > { %2979 = vmatmul.msk.f32.gmra.mxu2 %vm413_vm1, %v3529_v45  ;;  %2997 = vmatpush.msk.msrb.mxu3 %vm423_vm0, %v294_v42 }
  0xa5   : > { %2970 = vmatmul.msk.f32.vlgmr.msra.gmra.mxu0 %vm413_vm1, %v3509_v36 }
  0xa7   : > { %v288_v48 = vpop.permute.xlu0 %287 }
  0xa8   : > { %v295_v49 = vsel %vm293_vm2, %v288_v48, %v290_v38  ;;  %v286_v50 = vpop.permute.xlu1 %285 }
  0xa9   : > { %2993 = vmatpush.msk.msrb.mxu2 %vm423_vm0, %v295_v49  ;;  %v296_v52 = vsel %vm293_vm2, %v286_v50, %v288_v48  ;;  %v297_v53 = vsel %vm293_vm2, %v284_v39, %v286_v50 }
  0xaa   : > { %2983 = vmatmul.msk.f32.gmra.mxu3 %vm413_vm1, %v3529_v45  ;;  %2989 = vmatpush.msk.msrb.mxu1 %vm423_vm0, %v296_v52 }
  0xab   : > { %2975 = vmatmul.msk.f32.gmra.mxu1 %vm413_vm1, %v3529_v45  ;;  %2985 = vmatpush.msk.msrb.mxu0 %vm423_vm0, %v297_v53 }
  0xac   : > { %2980 = vmatmul.msk.f32.gmra.mxu2 %vm413_vm1, %v3549_v51 }
  0xad   : > { %2971 = vmatmul.msk.f32.gmra.mxu0 %vm413_vm1, %v3529_v45 }
  0xaf   : > { %v358_v54 = vpop.permute.xlu0 %357 }
  0xb0   : > { %v369_v55 = vsel %vm365_vm4, %v356_v47, %v358_v54  ;;  %v354_v56 = vpop.permute.xlu1 %353 }
  0xb1   : > { %v370_v58 = vsel %vm365_vm4, %v354_v56, %v356_v47  ;;  %v371_v59 = vsel %vm365_vm4, %v352_v57, %v354_v56  ;;  %3013 = vmatpush.msk.msra.mxu3 %vm423_vm0, %v369_v55 }
  0xb2   : > { %2984 = vmatmul.msk.f32.gmra.mxu3 %vm413_vm1, %v3549_v51  ;;  %3009 = vmatpush.msk.msra.mxu2 %vm423_vm0, %v370_v58 }
  0xb3   : > { %2976 = vmatmul.msk.f32.gmra.mxu1 %vm413_vm1, %v3549_v51 }
  0xb4   : > { %2994 = vmatmul.msk.f32.vlgmr.msrb.gmra.mxu2 %vm413_vm1, %v3509_v36  ;;  %3005 = vmatpush.msk.msra.mxu1 %vm423_vm0, %v371_v59 }
  0xb5   : > { %2972 = vmatmul.msk.f32.gmra.mxu0 %vm413_vm1, %v3549_v51 }
  0xb6   : > { %v483_v12 = vpop.f32.mrf.mxu1 }
  0xb7   : > { %v350_v61 = vpop.permute.xlu0 %349  ;;  %v3650_v13 = vpop.f32.mrf.mxu0 }
  0xb8   : > { %v372_v62 = vsel %vm365_vm4, %v350_v61, %v352_v57  ;;  %v364_v63 = vpop.permute.xlu1 %363 }
  0xb9   : > { %3001 = vmatpush.msk.msra.mxu0 %vm423_vm0, %v372_v62  ;;  %v373_v0 = vsel %vm365_vm4, %v364_v63, %v350_v61  ;;  %v366_v4 = vsel %vm365_vm4, %v362_v2, %v364_v63  ;;  %v509_v11 = vpop.f32.mrf.mxu2 }
  0xba   : > { %2998 = vmatmul.msk.f32.vlgmr.msrb.gmra.mxu3 %vm413_vm1, %v3509_v36  ;;  %v397_v1 = vsel %vm245_vm5, 0.0, %v373_v0  ;;  %3025 = vmatpush.msk.msrb.mxu2 %vm423_vm0, %v366_v4 }
  0xbb   : > { %2990 = vmatmul.msk.f32.vlgmr.msrb.gmra.mxu1 %vm413_vm1, %v3509_v36  ;;  %3029 = vmatpush.msk.msrb.mxu3 %vm423_vm0, %v397_v1  ;;  %v3652_v14 = vpop.f32.mrf.mxu3 }
  0xbc   : > { %2995 = vmatmul.msk.f32.gmra.mxu2 %vm413_vm1, %v3529_v45 }
  0xbd   : > { %2986 = vmatmul.msk.f32.vlgmr.msrb.gmra.mxu0 %vm413_vm1, %v3509_v36 }
  0xbe   : > { %v3660_v16 = vpop.f32.mrf.mxu1 }
  0xbf   : > { %v360_v5 = vpop.permute.xlu0 %359  ;;  %v3662_v17 = vpop.f32.mrf.mxu0 }
  0xc0   : > { %v368_v6 = vsel %vm365_vm4, %v358_v54, %v360_v5  ;;  %v367_v7 = vsel %vm365_vm4, %v360_v5, %v362_v2  ;;  %v3731_v2 = vpop.permute.xlu1 %1155 }
  0xc1   : > { %3017 = vmatpush.msk.msrb.mxu0 %vm423_vm0, %v368_v6  ;;  %3021 = vmatpush.msk.msrb.mxu1 %vm423_vm0, %v367_v7  ;;  %v3657_v15 = vpop.f32.mrf.mxu2 }
  0xc2   : > { %2999 = vmatmul.msk.f32.gmra.mxu3 %vm413_vm1, %v3529_v45 }
  0xc3   : > { %2991 = vmatmul.msk.f32.gmra.mxu1 %vm413_vm1, %v3529_v45  ;;  %v3666_v18 = vpop.f32.mrf.mxu3 }
  0xc4   : > { %2996 = vmatmul.msk.f32.gmra.mxu2 %vm413_vm1, %v3549_v51 }
  0xc5   : > { %2987 = vmatmul.msk.f32.gmra.mxu0 %vm413_vm1, %v3529_v45 }
  0xc6   : > { %v3672_v20 = vpop.f32.mrf.mxu1 }
  0xc7   : > { %v3675_v21 = vpop.f32.mrf.mxu0 }
  0xc9   : > { %v3670_v19 = vpop.f32.mrf.mxu2 }
  0xca   : > { %3000 = vmatmul.msk.f32.gmra.mxu3 %vm413_vm1, %v3549_v51 }
  0xcb   : > { %2992 = vmatmul.msk.f32.gmra.mxu1 %vm413_vm1, %v3549_v51  ;;  %v3679_v22 = vpop.f32.mrf.mxu3 }
  0xcc   : > { %3010 = vmatmul.msk.f32.vlgmr.msra.gmra.mxu2 %vm413_vm1, %v192_v8 }
  0xcd   : > { %2988 = vmatmul.msk.f32.gmra.mxu0 %vm413_vm1, %v3549_v51 }
  0xce   : > { %v3683_v24 = vpop.f32.mrf.mxu1 }
  0xcf   : > { %v3685_v25 = vpop.f32.mrf.mxu0 }
  0xd1   : > { %v3681_v23 = vpop.f32.mrf.mxu2 }
  0xd2   : > { %3014 = vmatmul.msk.f32.vlgmr.msra.gmra.mxu3 %vm413_vm1, %v192_v8 }
  0xd3   : > { %3006 = vmatmul.msk.f32.vlgmr.msra.gmra.mxu1 %vm413_vm1, %v192_v8  ;;  %v3687_v26 = vpop.f32.mrf.mxu3 }
  0xd4   : > { %3011 = vmatmul.msk.f32.gmra.mxu2 %vm413_vm1, %v193_v9 }
  0xd5   : > { %3002 = vmatmul.msk.f32.vlgmr.msra.gmra.mxu0 %vm413_vm1, %v192_v8 }
  0xd6   : > { %v3691_v28 = vpop.f32.mrf.mxu1 }
  0xd7   : > { %v3693_v29 = vpop.f32.mrf.mxu0 }
  0xd9   : > { %v3689_v27 = vpop.f32.mrf.mxu2 }
  0xda   : > { %3015 = vmatmul.msk.f32.gmra.mxu3 %vm413_vm1, %v193_v9 }
  0xdb   : > { %3007 = vmatmul.msk.f32.gmra.mxu1 %vm413_vm1, %v193_v9  ;;  %v3695_v30 = vpop.f32.mrf.mxu3 }
  0xdc   : > { %3012 = vmatmul.msk.f32.gmra.mxu2 %vm413_vm1, %v194_v10 }
  0xdd   : > { %3003 = vmatmul.msk.f32.gmra.mxu0 %vm413_vm1, %v193_v9 }
  0xde   : > { %v3699_v33 = vpop.f32.mrf.mxu1 }
  0xdf   : > { %v3701_v34 = vpop.f32.mrf.mxu0 }
  0xe1   : > { %v3697_v31 = vpop.f32.mrf.mxu2 }
  0xe2   : > { %3016 = vmatmul.msk.f32.gmra.mxu3 %vm413_vm1, %v194_v10 }
  0xe3   : > { %3008 = vmatmul.msk.f32.gmra.mxu1 %vm413_vm1, %v194_v10  ;;  %v3703_v35 = vpop.f32.mrf.mxu3 }
  0xe4   : > { %3026 = vmatmul.msk.f32.vlgmr.msrb.gmra.mxu2 %vm413_vm1, %v192_v8  ;;  %4426 = vst [vmem:[#allocation8_spill] sm:$0xff] %v3703_v35 }
  0xe5   : > { %3004 = vmatmul.msk.f32.gmra.mxu0 %vm413_vm1, %v194_v10 }
  0xea   : > { %3030 = vmatmul.msk.f32.vlgmr.msrb.gmra.mxu3 %vm413_vm1, %v192_v8 }
  0xeb   : > { %3022 = vmatmul.msk.f32.vlgmr.msrb.gmra.mxu1 %vm413_vm1, %v192_v8 }
  0xec   : > { %3027 = vmatmul.msk.f32.gmra.mxu2 %vm413_vm1, %v193_v9 }
  0xed   : > { %3018 = vmatmul.msk.f32.vlgmr.msrb.gmra.mxu0 %vm413_vm1, %v192_v8 }
  0xf2   : > { %3031 = vmatmul.msk.f32.gmra.mxu3 %vm413_vm1, %v193_v9 }
  0xf3   : > { %3023 = vmatmul.msk.f32.gmra.mxu1 %vm413_vm1, %v193_v9 }
  0xf4   : > { %3028 = vmatmul.msk.f32.gmra.mxu2 %vm413_vm1, %v194_v10 }
  0xf5   : > { %3019 = vmatmul.msk.f32.gmra.mxu0 %vm413_vm1, %v193_v9 }
  0xfa   : > { %3032 = vmatmul.msk.f32.gmra.mxu3 %vm413_vm1, %v194_v10 }
  0xfb   : > { %3024 = vmatmul.msk.f32.gmra.mxu1 %vm413_vm1, %v194_v10 }
  0xfd   : > { %3020 = vmatmul.msk.f32.gmra.mxu0 %vm413_vm1, %v194_v10 }
 0x11e   : > { %v750_v36 = vpop.f32.mrf.mxu2 }
 0x11f   : > { %v751_v63 = vadd.f32 %v750_v36, %v509_v11 }
 0x120   : > { %v724_v37 = vpop.f32.mrf.mxu1 }
 0x121   : > { %v725_v0 = vadd.f32 %v724_v37, %v483_v12 }
 0x122   : > { %v698_v38 = vpop.f32.mrf.mxu0 }
 0x123   : > { %v699_v5 = vadd.f32 %v698_v38, %v3650_v13 }
 0x125   : > { %v776_v39 = vpop.f32.mrf.mxu3 }
 0x126   : > { %v777_v35 = vadd.f32 %v776_v39, %v3652_v14 }
 0x127   : > { %v753_v40 = vpop.f32.mrf.mxu2 }
 0x128   : > { %v727_v41 = vpop.f32.mrf.mxu1  ;;  %v754_v37 = vadd.f32 %v753_v40, %v3657_v15 }
 0x129   : > { %v728_v38 = vadd.f32 %v727_v41, %v3660_v16 }
 0x12a   : > { %v701_v42 = vpop.f32.mrf.mxu0 }
 0x12b   : > { %v702_v15 = vadd.f32 %v701_v42, %v3662_v17 }
 0x12d   : > { %v779_v43 = vpop.f32.mrf.mxu3 }
 0x12f   : > { %v756_v44 = vpop.f32.mrf.mxu2 }
 0x130   : > { %v730_v46 = vpop.f32.mrf.mxu1 }
 0x131   : > { %v731_v42 = vadd.f32 %v730_v46, %v3672_v20 }
 0x132   : > { %v704_v47 = vpop.f32.mrf.mxu0 }
 0x135   : > { %v3705_v48 = vpop.f32.mrf.mxu3 }
 0x137   : > { %v3707_v49 = vpop.f32.mrf.mxu2 }
 0x138   : > { %v3709_v50 = vpop.f32.mrf.mxu1  ;;  %v855_v20 = vadd.f32 %v3707_v49, %v3681_v23 }
 0x139   : > { %v829_v46 = vadd.f32 %v3709_v50, %v3683_v24 }
 0x13a   : > { %v3711_v52 = vpop.f32.mrf.mxu0 }
 0x13d   : > { %v3713_v53 = vpop.f32.mrf.mxu3 }
 0x13e   : > { %v881_v23 = vadd.f32 %v3713_v53, %v3687_v26 }
 0x13f   : > { %v3715_v54 = vpop.f32.mrf.mxu2 }
 0x140   : > { %v3717_v55 = vpop.f32.mrf.mxu1 }
 0x142   : > { %v3719_v56 = vpop.f32.mrf.mxu0 }
 0x145   : > { %v3721_v57 = vpop.f32.mrf.mxu3 }
 0x147   : > { %v3723_v58 = vpop.f32.mrf.mxu2 }
 0x148   : > { %v3725_v59 = vpop.f32.mrf.mxu1 }
 0x14a   : > { %v3727_v61 = vpop.f32.mrf.mxu0 }
 0x14b   : > { %4427 = vst [vmem:[#allocation9_spill] sm:$0xff] %v3727_v61 }
 0x14d   : > { %v3729_v62 = vpop.f32.mrf.mxu3 }
 0x14f   : > { %v991_v1 = vpop.f32.mrf.mxu2 }
 0x150   : > { %v1132_v3 = vadd.f32 %v991_v1, %v751_v63  ;;  %v965_v4 = vpop.f32.mrf.mxu1 }
 0x151   : > { %v1131_v6 = vadd.f32 %v965_v4, %v725_v0  ;;  %v780_v4 = vadd.f32 %v779_v43, %v3666_v18 }
 0x152   : > { %v939_v7 = vpop.f32.mrf.mxu0  ;;  %v1168_v8 = vadd.f32 %v3731_v2, %v1132_v3 }
 0x153   : > { %v1167_v9 = vadd.f32 %v3731_v2, %v1131_v6  ;;  %v1130_v10 = vadd.f32 %v939_v7, %v699_v5  ;;  %v757_v6 = vadd.f32 %v756_v44, %v3670_v19  ;;  %v783_v19 = vadd.f32 %v3705_v48, %v3679_v22 }
 0x154   : > { %v3737_v61 = vmax.f32 %v1168_v8, 0.0 }
 0x155   : > { %v3739_v11 = vmax.f32 %v1167_v9, 0.0  ;;  %v1166_v12 = vadd.f32 %v3731_v2, %v1130_v10  ;;  %v1017_v36 = vpop.f32.mrf.mxu3  ;;  %v705_v10 = vadd.f32 %v704_v47, %v3675_v21 }
 0x156   : > { %1337 = vmatpush.msra.mxu2 %v3737_v61  ;;  %v1133_v13 = vadd.f32 %v1017_v36, %v777_v35 }
 0x157   : > { %v3745_v63 = vmax.f32 %v1166_v12, 0.0  ;;  %v994_v0 = vpop.f32.mrf.mxu2  ;;  %1317 = vmatpush.msra.mxu1 %v3739_v11  ;;  %v3165_v14 = vpack.i.bf16 %v3737_v61, %v3739_v11 }
 0x158   : > { %v3750_v39 = vadd.f32 %v994_v0, %v754_v37  ;;  %v1169_v1 = vadd.f32 %v3731_v2, %v1133_v13  ;;  %v968_v3 = vpop.f32.mrf.mxu1 }
 0x159   : > { %v3754_v40 = vadd.f32 %v968_v3, %v728_v38  ;;  %1214 = vrot.lane.b32.xlu0 %v3745_v63, %s3360_s9  ;;  %1297 = vmatpush.msra.mxu0 %v3745_v63 }
 0x15a   : > { %v1193_v16 = vmax.f32 %v1169_v1, 0.0  ;;  %3166 = vrot.lane.b32.xlu2 %v3165_v14, %s3360_s9  ;;  %v942_v35 = vpop.f32.mrf.mxu0 }
 0x15b   : > { %v3760_v41 = vadd.f32 %v942_v35, %v702_v15 }
 0x15c   : > { %1357 = vmatpush.msra.mxu3 %v1193_v16  ;;  %v3175_v53 = vpack.i.bf16 %v1193_v16, %v3737_v61 }
 0x15d   : > { %v1020_v5 = vpop.f32.mrf.mxu3 }
 0x15e   : > { %v3764_v17 = vadd.f32 %v1020_v5, %v780_v4  ;;  %v196_v4 = vld [vmem:[%s4421_s1 + $0x50] sm:$0xff]  ;;  %v3818_v5 = vld [vmem:[%s4421_s1 + $0x48] sm:$0xff] }
 0x15f   : > { %v997_v7 = vpop.f32.mrf.mxu2  ;;  %3035 = vmatmul.msk.f32.vlgmr.msra.gmra.mxu2 %vm1278_vm6, %v196_v4  ;;  %3034 = vmatmul.msk.f32.vlgmr.msra.gmra.mxu1 %vm1278_vm6, %v196_v4 }
 0x160   : > { %v3767_v8 = vadd.f32 %v997_v7, %v757_v6  ;;  %v971_v9 = vpop.f32.mrf.mxu1  ;;  %3033 = vmatmul.msk.f32.vlgmr.msra.gmra.mxu0 %vm1278_vm6, %v196_v4  ;;  %3036 = vmatmul.msk.f32.vlgmr.msra.gmra.mxu3 %vm1278_vm6, %v196_v4 }
 0x161   : > { %v3770_v12 = vadd.f32 %v971_v9, %v731_v42  ;;  %1159 = vperm.xlu0 %3164, %v3529_v45   ;;  %v803_v45 = vadd.f32 %v3711_v52, %v3685_v25 }
 0x162   : > { %4428 = vst [vmem:[#allocation10_spill] sm:$0xff] %v3767_v8  ;;  %v945_v36 = vpop.f32.mrf.mxu0 }
 0x163   : > { %4429 = vst [vmem:[#allocation11_spill] sm:$0xff] %v3770_v12  ;;  %v3773_v18 = vadd.f32 %v945_v36, %v705_v10 }
 0x165   : > { %v1023_v43 = vpop.f32.mrf.mxu3 }
 0x166   : > { %v3779_v44 = vadd.f32 %v1023_v43, %v783_v19  ;;  %v832_v19 = vadd.f32 %v3717_v55, %v3691_v28 }
 0x167   : > { %v1095_v21 = vpop.f32.mrf.mxu2 }
 0x168   : > { %4430 = vst [vmem:[#allocation12_spill] sm:$0xff] %v3779_v44  ;;  %v1136_v47 = vadd.f32 %v1095_v21, %v855_v20  ;;  %v1069_v37 = vpop.f32.mrf.mxu1  ;;  %v806_v21 = vadd.f32 %v3719_v56, %v3693_v29 }
 0x169   : > { %v1135_v13 = vadd.f32 %v1069_v37, %v829_v46  ;;  %v858_v46 = vadd.f32 %v3715_v54, %v3689_v27 }
 0x16a   : > { %v1172_v38 = vadd.f32 %v3731_v2, %v1136_v47  ;;  %v1043_v0 = vpop.f32.mrf.mxu0 }
 0x16b   : > { %v1171_v22 = vadd.f32 %v3731_v2, %v1135_v13  ;;  %v1134_v48 = vadd.f32 %v1043_v0, %v803_v45 }
 0x16c   : > { %v1196_v49 = vmax.f32 %v1172_v38, 0.0 }
 0x16d   : > { %v1195_v14 = vmax.f32 %v1171_v22, 0.0  ;;  %v1170_v24 = vadd.f32 %v3731_v2, %v1134_v48  ;;  %v1121_v50 = vpop.f32.mrf.mxu3 }
 0x16e   : > { %1417 = vmatpush.msrb.mxu2 %v1196_v49  ;;  %v1137_v1 = vadd.f32 %v1121_v50, %v881_v23 }
 0x16f   : > { %v1194_v3 = vmax.f32 %v1170_v24, 0.0  ;;  %1397 = vmatpush.msrb.mxu1 %v1195_v14  ;;  %v3170_v25 = vpack.i.bf16 %v1195_v14, %v1193_v16  ;;  %v3190_v52 = vpack.i.bf16 %v1195_v14, %v1196_v49  ;;  %3039 = vmatmul.msk.f32.vlgmr.msrb.gmra.mxu2 %vm1278_vm6, %v196_v4  ;;  %v1098_v43 = vpop.f32.mrf.mxu2  ;;  %v884_v14 = vadd.f32 %v3721_v57, %v3695_v30 }
 0x170   : > { %v1173_v15 = vadd.f32 %v3731_v2, %v1137_v1  ;;  %3038 = vmatmul.msk.f32.vlgmr.msrb.gmra.mxu1 %vm1278_vm6, %v196_v4  ;;  %v1072_v10 = vpop.f32.mrf.mxu1  ;;  %v1144_v37 = vadd.f32 %v1098_v43, %v858_v46 }
 0x171   : > { %1377 = vmatpush.msrb.mxu0 %v1194_v3  ;;  %3171 = vrot.lane.b32.xlu1 %v3170_v25, %s3360_s9  ;;  %v3180_v26 = vpack.i.bf16 %v1194_v3, %v1196_v49  ;;  %v3185_v2 = vpack.i.bf16 %v1194_v3, %v3739_v11  ;;  %v1143_v47 = vadd.f32 %v1072_v10, %v832_v19 }
 0x172   : > { %v1197_v35 = vmax.f32 %v1173_v15, 0.0  ;;  %3191 = vrot.lane.b32.xlu0 %v3190_v52, %s3361_s17  ;;  %3037 = vmatmul.msk.f32.vlgmr.msrb.gmra.mxu0 %vm1278_vm6, %v196_v4  ;;  %v1046_v20 = vpop.f32.mrf.mxu0 }
 0x173   : > { %v1142_v45 = vadd.f32 %v1046_v20, %v806_v21 }
 0x174   : > { %1437 = vmatpush.msrb.mxu3 %v1197_v35  ;;  %1228 = vrot.lane.b32.xlu2 %v1197_v35, %s3360_s9 }
 0x175   : > { %3040 = vmatmul.msk.f32.vlgmr.msrb.gmra.mxu3 %vm1278_vm6, %v196_v4 }
 0x178   : > { %v4047_v32 = vpop.f32.mrf.mxu1 }
 0x179   : > { %3181 = vrot.lane.b32.xlu1 %v3180_v26, %s3360_s9 }
 0x17a   : > { %v3978_v60 = vpop.f32.mrf.mxu0 }
 0x17c   : > { %3176 = vrot.lane.b32.xlu2 %v3175_v53, %s3361_s17 }
 0x181   : > { %1246 = vrot.lane.b32.xlu1 %v3745_v63, %s3361_s17 }
 0x184   : > { %3186 = vrot.lane.b32.xlu2 %v3185_v2, %s3361_s17 }
 0x189   : > { %1260 = vrot.lane.b32.xlu1 %v1197_v35, %s3361_s17 }
 0x1b4   : > { %v3167_v61 = vpop.permute.xlu2 %3166 }
 0x1b5   : > { %v3169_v11 = vunpack.i.h.bf16 %v3167_v61  ;;  %v3168_v63 = vunpack.i.l.bf16 %v3167_v61 }
 0x1b7   : > { %v1235_v16 = vsel %vm293_vm2, %v3168_v63, %v3169_v11 }
 0x1b8   : > { %1500 = vmatpush.msra.mxu2 %v1235_v16 }
 0x1b9   : > { %3045 = vmatmul.msk.f32.vlgmr.msra.gmra.mxu2 %vm1278_vm6, %v3818_v5 }
 0x1cb   : > { %v1215_v6 = vpop.permute.xlu0 %1214 }
 0x1cc   : > { %v1236_v42 = vsel %vm293_vm2, %v1215_v6, %v3168_v63 }
 0x1cd   : > { %1480 = vmatpush.msra.mxu1 %v1236_v42 }
 0x1ce   : > { %v3830_v9 = vpop.permute.xlu2 %1228  ;;  %3044 = vmatmul.msk.f32.vlgmr.msra.gmra.mxu1 %vm1278_vm6, %v3818_v5 }
 0x1cf   : > { %v1237_v36 = vsel %vm293_vm2, %v3830_v9, %v1215_v6 }
 0x1d0   : > { %3042 = vmatpush.msk.msra.mxu0 %vm3826_vm7, %v1237_v36 }
 0x1d1   : > { %3043 = vmatmul.msk.f32.vlgmr.msra.gmra.mxu0 %vm1278_vm6, %v3818_v5 }
 0x1d3   : > { %v1160_v13 = vpop.permute.xlu0 %1159 }
 0x1d4   : > { %v1174_v28 = vadd.f32 %v1160_v13, %v3760_v41  ;;  %v1177_v55 = vadd.f32 %v1160_v13, %v3764_v17  ;;  %v1179_v38 = vadd.f32 %v1160_v13, %v1143_v47  ;;  %v1175_v0 = vadd.f32 %v1160_v13, %v3754_v40  ;;  %v1124_v17 = vpop.f32.mrf.mxu3 }
 0x1d5   : > { %v1176_v22 = vadd.f32 %v1160_v13, %v3750_v39  ;;  %v1178_v27 = vadd.f32 %v1160_v13, %v1142_v45  ;;  %v1180_v54 = vadd.f32 %v1160_v13, %v1144_v37  ;;  %v1145_v52 = vadd.f32 %v1124_v17, %v884_v14  ;;  %v3918_v37 = vld [vmem:[%s4421_s1 + $0x60] sm:$0xff] }
 0x1d6   : > { %v3851_v48 = vmax.f32 %v1174_v28, 0.0  ;;  %v3853_v29 = vmax.f32 %v1177_v55, 0.0  ;;  %v3855_v56 = vmax.f32 %v1179_v38, 0.0  ;;  %v3857_v23 = vmax.f32 %v1175_v0, 0.0  ;;  %v3177_v57 = vpop.permute.xlu2 %3176  ;;  %v197_v0 = vld [vmem:[%s4421_s1 + $0x58] sm:$0xff] }
 0x1d7   : > { %v3859_v49 = vmax.f32 %v1176_v22, 0.0  ;;  %v3861_v41 = vmax.f32 %v1178_v27, 0.0  ;;  %v3867_v40 = vmax.f32 %v1180_v54, 0.0  ;;  %v1181_v30 = vadd.f32 %v1160_v13, %v1145_v52 }
 0x1d8   : > { %1796 = vrot.lane.b32.xlu0 %v3851_v48, %s3360_s9  ;;  %v3200_v39 = vpack.i.bf16 %v3855_v56, %v3853_v29  ;;  %v3179_v43 = vunpack.i.h.bf16 %v3177_v57  ;;  %v3178_v20 = vunpack.i.l.bf16 %v3177_v57 }
 0x1d9   : > { %v3195_v24 = vpack.i.bf16 %v3859_v49, %v3857_v23  ;;  %v3210_v50 = vpack.i.bf16 %v3853_v29, %v3859_v49  ;;  %v3215_v1 = vpack.i.bf16 %v3861_v41, %v3857_v23  ;;  %v3205_v3 = vpack.i.bf16 %v3861_v41, %v3867_v40 }
 0x1da   : > { %3201 = vrot.lane.b32.xlu1 %v3200_v39, %s3360_s9  ;;  %v3220_v25 = vpack.i.bf16 %v3855_v56, %v3867_v40  ;;  %v3884_v15 = vmax.f32 %v1181_v30, 0.0  ;;  %v1266_v45 = vsel %vm365_vm4, %v3178_v20, %v3179_v43 }
 0x1db   : > { %3196 = vrot.lane.b32.xlu2 %v3195_v24, %s3360_s9 }
 0x1de   : > { %v3187_v2 = vpop.permute.xlu2 %3186 }
 0x1df   : > { %v3188_v6 = vunpack.i.l.bf16 %v3187_v2  ;;  %v3189_v46 = vunpack.i.h.bf16 %v3187_v2 }
 0x1e0   : > { %3206 = vrot.lane.b32.xlu0 %v3205_v3, %s3360_s9 }
 0x1e1   : > { %v1265_v13 = vsel %vm365_vm4, %v3179_v43, %v3189_v46 }
 0x1e2   : > { %3211 = vrot.lane.b32.xlu1 %v3210_v50, %s3361_s17 }
 0x1e3   : > { %1810 = vrot.lane.b32.xlu2 %v3884_v15, %s3360_s9  ;;  %v3172_v35 = vpop.permute.xlu1 %3171  ;;  %s2852_s9 = scalar_lea.hbm %s4423_s3, %s3098_s24 }
 0x1e4   : > { %v3173_v26 = vunpack.i.l.bf16 %v3172_v35  ;;  %v3174_v61 = vunpack.i.h.bf16 %v3172_v35  ;;  %v3192_v42 = vpop.permute.xlu0 %3191  ;;  %s2856_s28 = sshll.u32 %s2852_s9, 4  ;;  %s2857_s28 = int_to_ptr.hbm [resolvable:$true] %s2856_s28 }
 0x1e5   : > { %v3194_v21 = vunpack.i.h.bf16 %v3192_v42  ;;  %v3193_v47 = vunpack.i.l.bf16 %v3192_v42  ;;  %s3303_s29 = sshra.s32 %s2857_s28, 4  ;;  %s3304_s29 = int_to_ptr.hbm [resolvable:$true] %s3303_s29 }
 0x1e6   : > { %v1234_v53 = vsel %vm293_vm2, %v3169_v11, %v3173_v26  ;;  %s3305_s30 = scalar_lea.hbm %s3304_s29, 8  ;;  %p3310_p3 = scmp.lt.s32.totalorder %s3304_s29, %s4423_s3 }
 0x1e7   : > { %1520 = vmatpush.msra.mxu3 %v1234_v53  ;;  %v1264_v38 = vsel %vm365_vm4, %v3189_v46, %v3194_v21  ;;  %p3306_p0 = scmp.ne.s32.totalorder %s3304_s29, %s3305_s30 }
 0x1e8   : > { %3216 = vrot.lane.b32.xlu0 %v3215_v1, %s3361_s17  ;;  %3046 = vmatmul.msk.f32.vlgmr.msra.gmra.mxu3 %vm1278_vm6, %v3818_v5 }
 0x1e9   : > { %p3307_p1 = pnand %p3306_p0, %p3421_p5 }
 0x1ea   : > { %3221 = vrot.lane.b32.xlu1 %v3220_v25, %s3361_s17 }
 0x1eb   : > { %1828 = vrot.lane.b32.xlu2 %v3851_v48, %s3361_s17  ;;  %v3182_v4 = vpop.permute.xlu1 %3181  ;;  %p3308_p2 = pneg %p3307_p1 }
 0x1ec   : > { %v3184_v63 = vunpack.i.h.bf16 %v3182_v4  ;;  %v3183_v16 = vunpack.i.l.bf16 %v3182_v4 }
 0x1ee   : > { %v1232_v11 = vsel %vm293_vm2, %v3184_v63, %v3174_v61  ;;  %v1231_v10 = vsel %vm293_vm2, %v3174_v61, %v3183_v16  ;;  %v1230_v36 = vsel %vm293_vm2, %v3183_v16, %v3830_v9  ;;  %v1233_v19 = vsel %vm293_vm2, %v3173_v26, %v3184_v63 }
 0x1ef   : > { %1560 = vmatpush.msrb.mxu1 %v1232_v11  ;;  %1580 = vmatpush.msrb.mxu2 %v1231_v10  ;;  %v1267_v9 = vsel %vm365_vm4, %v3188_v6, %v3178_v20 }
 0x1f0   : > { %1600 = vmatpush.msrb.mxu3 %v1230_v36  ;;  %1777 = vperm.xlu0 %3164, %v3818_v5  }
 0x1f1   : > { %1540 = vmatpush.msrb.mxu0 %v1233_v19  ;;  %3048 = vmatmul.msk.f32.vlgmr.msrb.gmra.mxu1 %vm1278_vm6, %v3818_v5 }
 0x1f2   : > { %3047 = vmatmul.msk.f32.vlgmr.msrb.gmra.mxu0 %vm1278_vm6, %v3818_v5  ;;  %3049 = vmatmul.msk.f32.vlgmr.msrb.gmra.mxu2 %vm1278_vm6, %v3818_v5 }
 0x1f3   : > { %3050 = vmatmul.msk.f32.vlgmr.msrb.gmra.mxu3 %vm1278_vm6, %v3818_v5  ;;  %1643 = vmatpush.msra.mxu1 %v1267_v9  ;;  %v1247_v28 = vpop.permute.xlu1 %1246  ;;  %v1263_v5 = vsel %vm365_vm4, %v3194_v21, %v3193_v47 }
 0x1f4   : > { %1663 = vmatpush.msra.mxu2 %v1266_v45  ;;  %1683 = vmatpush.msra.mxu3 %v1265_v13  ;;  %v1268_v55 = vsel %vm365_vm4, %v1247_v28, %v3188_v6 }
 0x1f5   : > { %2358 = vperm.xlu1 %3163, %v3918_v37   ;;  %1842 = vrot.lane.b32.xlu2 %v3884_v15, %s3361_s17  ;;  %s2842_s17 = scalar_lea.sflag [#allocation4], %s178_s19 }
 0x1f6   : > { %1723 = vmatpush.msrb.mxu1 %v1263_v5  ;;  %1623 = vmatpush.msra.mxu0 %v1268_v55  ;;  %v4049_v55 = vpop.f32.mrf.mxu2  ;;  %v4051_v5 = vpop.f32.mrf.mxu3 }
 0x1f8   : > { %1703 = vmatpush.msrb.mxu0 %v1264_v38  ;;  %v1319_v38 = vpop.f32.mrf.mxu1 }
 0x1f9   : > { %3052 = vmatmul.msk.f32.vlgmr.msra.gmra.mxu1 %vm1278_vm6, %v197_v0 }
 0x1fa   : > { %3051 = vmatmul.msk.f32.vlgmr.msra.gmra.mxu0 %vm1278_vm6, %v197_v0  ;;  %3053 = vmatmul.msk.f32.vlgmr.msra.gmra.mxu2 %vm1278_vm6, %v197_v0 }
 0x1fb   : > { %3054 = vmatmul.msk.f32.vlgmr.msra.gmra.mxu3 %vm1278_vm6, %v197_v0  ;;  %1878 = vmatpush.msra.mxu0 %v3851_v48  ;;  %v1261_v27 = vpop.permute.xlu1 %1260 }
 0x1fc   : > { %1898 = vmatpush.msra.mxu1 %v3857_v23  ;;  %v1262_v54 = vsel %vm365_vm4, %v3193_v47, %v1261_v27  ;;  %v1269_v17 = vsel %vm365_vm4, %v1261_v27, %v1247_v28  ;;  %v200_v47 = vld [vmem:[%s4421_s1 + $0x70] sm:$0xff] }
 0x1fd   : > { %1163 = vperm.xlu1 %3163, %v3549_v51   ;;  %1743 = vmatpush.msrb.mxu2 %v1262_v54  ;;  %v199_v51 = vld [vmem:[%s4421_s1 + $0x68] sm:$0xff] }
 0x1fe   : > { %3059 = vmatpush.msk.msrb.mxu3 %vm3943_vm8, %v1269_v17  ;;  %v1359_v22 = vpop.f32.mrf.mxu3 }
 0x1ff   : > { %1918 = vmatpush.msra.mxu2 %v3859_v49  ;;  %v1299_v49 = vpop.f32.mrf.mxu0 }
 0x200   : > { %1938 = vmatpush.msra.mxu3 %v3853_v29  ;;  %v1399_v27 = vpop.f32.mrf.mxu1 }
 0x201   : > { %3056 = vmatmul.msk.f32.vlgmr.msrb.gmra.mxu1 %vm1278_vm6, %v197_v0 }
 0x202   : > { %3055 = vmatmul.msk.f32.vlgmr.msrb.gmra.mxu0 %vm1278_vm6, %v197_v0  ;;  %3057 = vmatmul.msk.f32.vlgmr.msrb.gmra.mxu2 %vm1278_vm6, %v197_v0 }
 0x203   : > { %3060 = vmatmul.msk.f32.vlgmr.msrb.gmra.mxu3 %vm1278_vm6, %v197_v0  ;;  %1958 = vmatpush.msrb.mxu0 %v3861_v41  ;;  %v1339_v0 = vpop.f32.mrf.mxu2 }
 0x204   : > { %1978 = vmatpush.msrb.mxu1 %v3855_v56  ;;  %1998 = vmatpush.msrb.mxu2 %v3867_v40 }
 0x205   : > { %2018 = vmatpush.msrb.mxu3 %v3884_v15 }
 0x206   : > { %v1439_v17 = vpop.f32.mrf.mxu3 }
 0x207   : > { %v3984_v41 = vpop.f32.mrf.mxu0 }
 0x209   : > { %3062 = vmatmul.msk.f32.vlgmr.msra.gmra.mxu1 %vm1278_vm6, %v199_v51 }
 0x20a   : > { %3063 = vmatmul.msk.f32.vlgmr.msra.gmra.mxu2 %vm1278_vm6, %v199_v51  ;;  %3061 = vmatmul.msk.f32.vlgmr.msra.gmra.mxu0 %vm1278_vm6, %v199_v51 }
 0x20b   : > { %3064 = vmatmul.msk.f32.vlgmr.msra.gmra.mxu3 %vm1278_vm6, %v199_v51  ;;  %v1419_v54 = vpop.f32.mrf.mxu2 }
 0x211   : > { %3066 = vmatmul.msk.f32.vlgmr.msrb.gmra.mxu1 %vm1278_vm6, %v199_v51 }
 0x212   : > { %3065 = vmatmul.msk.f32.vlgmr.msrb.gmra.mxu0 %vm1278_vm6, %v199_v51  ;;  %3067 = vmatmul.msk.f32.vlgmr.msrb.gmra.mxu2 %vm1278_vm6, %v199_v51 }
 0x213   : > { %3068 = vmatmul.msk.f32.vlgmr.msrb.gmra.mxu3 %vm1278_vm6, %v199_v51 }
 0x235   : > { %v3197_v48 = vpop.permute.xlu2 %3196 }
 0x236   : > { %v3199_v29 = vunpack.i.h.bf16 %v3197_v48  ;;  %v3198_v56 = vunpack.i.l.bf16 %v3197_v48 }
 0x238   : > { %v1817_v23 = vsel %vm293_vm2, %v3198_v56, %v3199_v29 }
 0x239   : > { %2081 = vmatpush.msra.mxu2 %v1817_v23 }
 0x23a   : > { %3073 = vmatmul.msk.f32.vlgmr.msra.gmra.mxu2 %vm1278_vm6, %v3918_v37 }
 0x23c   : > { %v1502_v48 = vpop.f32.mrf.mxu2 }
 0x23d   : > { %v1811_v39 = vpop.permute.xlu2 %1810 }
 0x245   : > { %v1829_v30 = vpop.permute.xlu2 %1828 }
 0x24a   : > { %v1797_v40 = vpop.permute.xlu0 %1796 }
 0x24b   : > { %v1818_v14 = vsel %vm293_vm2, %v1797_v40, %v3198_v56  ;;  %v1819_v24 = vsel %vm293_vm2, %v1811_v39, %v1797_v40  ;;  %v1482_v51 = vpop.f32.mrf.mxu1 }
 0x24c   : > { %v3202_v50 = vpop.permute.xlu1 %3201  ;;  %3070 = vmatpush.msk.msra.mxu0 %vm3826_vm7, %v1819_v24  ;;  %2061 = vmatpush.msra.mxu1 %v1818_v14 }
 0x24d   : > { %v3203_v1 = vunpack.i.l.bf16 %v3202_v50  ;;  %3071 = vmatmul.msk.f32.vlgmr.msra.gmra.mxu0 %vm1278_vm6, %v3918_v37  ;;  %3072 = vmatmul.msk.f32.vlgmr.msra.gmra.mxu1 %vm1278_vm6, %v3918_v37  ;;  %v3204_v57 = vunpack.i.h.bf16 %v3202_v50 }
 0x24e   : > { %v1462_v3 = vpop.f32.mrf.mxu0 }
 0x24f   : > { %v1816_v25 = vsel %vm293_vm2, %v3199_v29, %v3203_v1  ;;  %v3998_v52 = vadd.f32 %v1462_v3, %v1299_v49  ;;  %v1843_v19 = vpop.permute.xlu2 %1842 }
 0x250   : > { %2101 = vmatpush.msra.mxu3 %v1816_v25  ;;  %v1851_v13 = vsel %vm365_vm4, %v1843_v19, %v1829_v30 }
 0x251   : > { %3074 = vmatmul.msk.f32.vlgmr.msra.gmra.mxu3 %vm1278_vm6, %v3918_v37 }
 0x252   : > { %v3207_v7 = vpop.permute.xlu0 %3206 }
 0x253   : > { %v3209_v15 = vunpack.i.h.bf16 %v3207_v7  ;;  %v3208_v35 = vunpack.i.l.bf16 %v3207_v7 }
 0x254   : > { %v3212_v26 = vpop.permute.xlu1 %3211 }
 0x255   : > { %v3214_v53 = vunpack.i.h.bf16 %v3212_v26  ;;  %v3213_v2 = vunpack.i.l.bf16 %v3212_v26  ;;  %v1815_v4 = vsel %vm293_vm2, %v3203_v1, %v3209_v15  ;;  %v1814_v61 = vsel %vm293_vm2, %v3209_v15, %v3204_v57 }
 0x256   : > { %2121 = vmatpush.msrb.mxu0 %v1815_v4  ;;  %2141 = vmatpush.msrb.mxu1 %v1814_v61  ;;  %v1813_v63 = vsel %vm293_vm2, %v3204_v57, %v3208_v35  ;;  %v1812_v16 = vsel %vm293_vm2, %v3208_v35, %v1811_v39 }
 0x257   : > { %2161 = vmatpush.msrb.mxu2 %v1813_v63  ;;  %2181 = vmatpush.msrb.mxu3 %v1812_v16  ;;  %v1848_v6 = vsel %vm365_vm4, %v3213_v2, %v3214_v53 }
 0x258   : > { %3075 = vmatmul.msk.f32.vlgmr.msrb.gmra.mxu0 %vm1278_vm6, %v3918_v37  ;;  %3076 = vmatmul.msk.f32.vlgmr.msrb.gmra.mxu1 %vm1278_vm6, %v3918_v37 }
 0x259   : > { %3077 = vmatmul.msk.f32.vlgmr.msrb.gmra.mxu2 %vm1278_vm6, %v3918_v37  ;;  %3078 = vmatmul.msk.f32.vlgmr.msrb.gmra.mxu3 %vm1278_vm6, %v3918_v37 }
 0x25a   : > { %2244 = vmatpush.msra.mxu2 %v1848_v6  ;;  %v3217_v42 = vpop.permute.xlu0 %3216 }
 0x25b   : > { %v3219_v11 = vunpack.i.h.bf16 %v3217_v42  ;;  %v3218_v10 = vunpack.i.l.bf16 %v3217_v42  ;;  %v1483_v42 = vadd.f32 %v1482_v51, %v1319_v38 }
 0x25c   : > { %v3222_v36 = vpop.permute.xlu1 %3221 }
 0x25d   : > { %v3224_v43 = vunpack.i.h.bf16 %v3222_v36  ;;  %v3223_v20 = vunpack.i.l.bf16 %v3222_v36  ;;  %v1850_v46 = vsel %vm365_vm4, %v1829_v30, %v3218_v10  ;;  %v1849_v21 = vsel %vm365_vm4, %v3218_v10, %v3213_v2 }
 0x25e   : > { %2204 = vmatpush.msra.mxu0 %v1850_v46  ;;  %2224 = vmatpush.msra.mxu1 %v1849_v21  ;;  %v1847_v9 = vsel %vm365_vm4, %v3214_v53, %v3219_v11  ;;  %v1503_v36 = vadd.f32 %v1502_v48, %v1339_v0 }
 0x25f   : > { %2264 = vmatpush.msra.mxu3 %v1847_v9  ;;  %v1846_v37 = vsel %vm365_vm4, %v3219_v11, %v3224_v43  ;;  %v1845_v45 = vsel %vm365_vm4, %v3224_v43, %v3223_v20  ;;  %v1844_v28 = vsel %vm365_vm4, %v3223_v20, %v1843_v19 }
 0x260   : > { %3079 = vmatmul.msk.f32.vlgmr.msra.gmra.mxu0 %vm1278_vm6, %v200_v47  ;;  %3080 = vmatmul.msk.f32.vlgmr.msra.gmra.mxu1 %vm1278_vm6, %v200_v47 }
 0x261   : > { %3081 = vmatmul.msk.f32.vlgmr.msra.gmra.mxu2 %vm1278_vm6, %v200_v47  ;;  %3087 = vmatpush.msk.msrb.mxu3 %vm3943_vm8, %v1851_v13 }
 0x262   : > { %2284 = vmatpush.msrb.mxu0 %v1846_v37  ;;  %2304 = vmatpush.msrb.mxu1 %v1845_v45  ;;  %v1778_v21 = vpop.permute.xlu0 %1777 }
 0x263   : > { %2324 = vmatpush.msrb.mxu2 %v1844_v28  ;;  %3082 = vmatmul.msk.f32.vlgmr.msra.gmra.mxu3 %vm1278_vm6, %v200_v47 }
 0x268   : > { %3083 = vmatmul.msk.f32.vlgmr.msrb.gmra.mxu0 %vm1278_vm6, %v200_v47  ;;  %3084 = vmatmul.msk.f32.vlgmr.msrb.gmra.mxu1 %vm1278_vm6, %v200_v47 }
 0x269   : > { %3085 = vmatmul.msk.f32.vlgmr.msrb.gmra.mxu2 %vm1278_vm6, %v200_v47 }
 0x26b   : > { %3088 = vmatmul.msk.f32.vlgmr.msrb.gmra.mxu3 %vm1278_vm6, %v200_v47  ;;  %v1522_v29 = vpop.f32.mrf.mxu3 }
 0x26c   : > { %v1523_v19 = vadd.f32 %v1522_v29, %v1359_v22  ;;  %v4061_v29 = vpop.permute.xlu1 %2358 }
 0x26e   : > { %v1562_v23 = vpop.f32.mrf.mxu1 }
 0x26f   : > { %v1542_v56 = vpop.f32.mrf.mxu0  ;;  %v1563_v20 = vadd.f32 %v1562_v23, %v1399_v27 }
 0x270   : > { %v1543_v47 = vadd.f32 %v1542_v56, %v3984_v41 }
 0x275   : > { %v1582_v49 = vpop.f32.mrf.mxu2 }
 0x276   : > { %v1602_v39 = vpop.f32.mrf.mxu3  ;;  %v1645_v14 = vpop.f32.mrf.mxu1  ;;  %v1583_v44 = vadd.f32 %v1582_v49, %v1419_v54 }
 0x277   : > { %v1625_v40 = vpop.f32.mrf.mxu0  ;;  %v1769_v43 = vadd.f32 %v1645_v14, %v1483_v42 }
 0x278   : > { %v1768_v46 = vadd.f32 %v1625_v40, %v3998_v52  ;;  %v1603_v52 = vadd.f32 %v1602_v39, %v1439_v17 }
 0x279   : > { %v1781_v8 = vadd.f32 %v1778_v21, %v1769_v43 }
 0x27a   : > { %v1780_v0 = vadd.f32 %v1778_v21, %v1768_v46 }
 0x27b   : > { %v1789_v14 = vmax.f32 %v1781_v8, 0.0 }
 0x27c   : > { %v1788_v49 = vmax.f32 %v1780_v0, 0.0 }
 0x27d   : > { %v1665_v24 = vpop.f32.mrf.mxu2 }
 0x27e   : > { %v1685_v50 = vpop.f32.mrf.mxu3  ;;  %v1725_v3 = vpop.f32.mrf.mxu1  ;;  %v1770_v9 = vadd.f32 %v1665_v24, %v1503_v36 }
 0x27f   : > { %v1705_v1 = vpop.f32.mrf.mxu0  ;;  %v1771_v38 = vadd.f32 %v1685_v50, %v1523_v19  ;;  %v1773_v22 = vadd.f32 %v1725_v3, %v1563_v20 }
 0x280   : > { %v1782_v23 = vadd.f32 %v1778_v21, %v1770_v9  ;;  %v1772_v41 = vadd.f32 %v1705_v1, %v1543_v47 }
 0x281   : > { %v1783_v24 = vadd.f32 %v1778_v21, %v1771_v38  ;;  %v1785_v50 = vadd.f32 %v1778_v21, %v1773_v22 }
 0x282   : > { %v1784_v3 = vadd.f32 %v1778_v21, %v1772_v41 }
 0x283   : > { %v1791_v19 = vmax.f32 %v1783_v24, 0.0 }
 0x285   : > { %v1745_v25 = vpop.f32.mrf.mxu2 }
 0x286   : > { %v1765_v7 = vpop.f32.mrf.mxu3  ;;  %v1900_v57 = vpop.f32.mrf.mxu1  ;;  %v1774_v54 = vadd.f32 %v1745_v25, %v1583_v44 }
 0x287   : > { %v1880_v30 = vpop.f32.mrf.mxu0 }
 0x288   : > { %v4069_v43 = vadd.f32 %v1778_v21, %v1774_v54 }
 0x28a   : > { %v1794_v38 = vmax.f32 %v4069_v43, 0.0 }
 0x28d   : > { %v1920_v15 = vpop.f32.mrf.mxu2 }
 0x28e   : > { %v1940_v35 = vpop.f32.mrf.mxu3  ;;  %v1980_v53 = vpop.f32.mrf.mxu1 }
 0x28f   : > { %v1960_v26 = vpop.f32.mrf.mxu0 }
 0x295   : > { %v4053_v2 = vpop.f32.mrf.mxu2 }
 0x296   : > { %v4055_v4 = vpop.f32.mrf.mxu3 }
 0x2bd   : > { %v2083_v16 = vpop.f32.mrf.mxu2 }
 0x2ca   : > { %v2043_v61 = vpop.f32.mrf.mxu0  ;;  %v2063_v63 = vpop.f32.mrf.mxu1 }
 0x2cb   : > { %v2044_v37 = vadd.f32 %v2043_v61, %v1880_v30  ;;  %v2064_v45 = vadd.f32 %v2063_v63, %v1900_v57  ;;  %v1790_v61 = vmax.f32 %v1782_v23, 0.0  ;;  %v1775_v63 = vadd.f32 %v1765_v7, %v1603_v52 }
 0x2d4   : > { %v2103_v6 = vpop.f32.mrf.mxu3 }
 0x2d5   : > { %v2123_v11 = vpop.f32.mrf.mxu0  ;;  %v2143_v10 = vpop.f32.mrf.mxu1  ;;  %v2104_v8 = vadd.f32 %v2103_v6, %v1940_v35 }
 0x2d6   : > { %v2124_v42 = vadd.f32 %v2123_v11, %v1960_v26  ;;  %v2144_v36 = vadd.f32 %v2143_v10, %v1980_v53  ;;  %v1793_v53 = vmax.f32 %v1785_v50, 0.0 }
 0x2dc   : > { %v2163_v13 = vpop.f32.mrf.mxu2  ;;  %v4059_v28 = vpop.f32.mrf.mxu3 }
 0x2dd   : > { %v2206_v51 = vpop.f32.mrf.mxu0  ;;  %v2226_v12 = vpop.f32.mrf.mxu1  ;;  %v2164_v23 = vadd.f32 %v2163_v13, %v4053_v2  ;;  %v2184_v50 = vadd.f32 %v4059_v28, %v4055_v4 }
 0x2de   : > { %v2349_v48 = vadd.f32 %v2206_v51, %v2044_v37  ;;  %v2350_v27 = vadd.f32 %v2226_v12, %v2064_v45  ;;  %v2084_v12 = vadd.f32 %v2083_v16, %v1920_v15  ;;  %v1787_v16 = vadd.f32 %v1778_v21, %v1775_v63 }
 0x2df   : > { %v1792_v45 = vmax.f32 %v1784_v3, 0.0 }
 0x2e0   : > { %v2361_v56 = vadd.f32 %v4061_v29, %v2349_v48  ;;  %v2362_v40 = vadd.f32 %v4061_v29, %v2350_v27  ;;  %v1795_v52 = vmax.f32 %v1787_v16, 0.0 }
 0x2e2   : > { %v2369_v30 = vmax.f32 %v2361_v56, 0.0  ;;  %v2370_v57 = vmax.f32 %v2362_v40, 0.0 }
 0x2e4   : > { %v4065_v17 = vmul.f32 %v2369_v30, %v1788_v49  ;;  %v4067_v39 = vmul.f32 %v2370_v57, %v1789_v14  ;;  %v2246_v1 = vpop.f32.mrf.mxu2 }
 0x2e5   : > { %v2351_v44 = vadd.f32 %v2246_v1, %v2084_v12  ;;  %v2286_v25 = vpop.f32.mrf.mxu0  ;;  %v2306_v20 = vpop.f32.mrf.mxu1 }
 0x2e6   : > { %v2385_v46 = vrot.slane %v4065_v17, 4  ;;  %v2391_v47 = vrot.slane %v4067_v39, 4  ;;  %v2266_v7 = vpop.f32.mrf.mxu3  ;;  %v2353_v15 = vadd.f32 %v2286_v25, %v2124_v42  ;;  %v2354_v26 = vadd.f32 %v2306_v20, %v2144_v36 }
 0x2e7   : > { %v2363_v11 = vadd.f32 %v4061_v29, %v2351_v44  ;;  %v2352_v10 = vadd.f32 %v2266_v7, %v2104_v8 }
 0x2e8   : > { %v2386_v9 = vmax.f32 %v4065_v17, %v2385_v46  ;;  %v2392_v37 = vmax.f32 %v4067_v39, %v2391_v47  ;;  %v2365_v35 = vadd.f32 %v4061_v29, %v2353_v15  ;;  %v2366_v6 = vadd.f32 %v4061_v29, %v2354_v26 }
 0x2e9   : > { %v2371_v51 = vmax.f32 %v2363_v11, 0.0  ;;  %v2364_v0 = vadd.f32 %v4061_v29, %v2352_v10 }
 0x2ea   : > { %v2387_v22 = vrot.slane %v2386_v9, 2  ;;  %v2393_v48 = vrot.slane %v2392_v37, 2  ;;  %v2373_v21 = vmax.f32 %v2365_v35, 0.0  ;;  %v2374_v27 = vmax.f32 %v2366_v6, 0.0 }
 0x2eb   : > { %v2379_v41 = vmul.f32 %v2371_v51, %v1790_v61  ;;  %v2372_v56 = vmax.f32 %v2364_v0, 0.0 }
 0x2ec   : > { %v2388_v40 = vmax.f32 %v2386_v9, %v2387_v22  ;;  %v2394_v14 = vmax.f32 %v2392_v37, %v2393_v48  ;;  %v2381_v24 = vmul.f32 %v2373_v21, %v1792_v45  ;;  %v2382_v54 = vmul.f32 %v2374_v27, %v1793_v53  ;;  %v2326_v49 = vpop.f32.mrf.mxu2 }
 0x2ed   : > { %v2397_v30 = vrot.slane %v2379_v41, 4  ;;  %v2380_v57 = vmul.f32 %v2372_v56, %v1791_v19  ;;  %v2355_v3 = vadd.f32 %v2326_v49, %v2164_v23 }
 0x2ee   : > { %v2389_v63 = vrot.slane %v2388_v40, 1  ;;  %v2395_v12 = vrot.slane %v2394_v14, 1  ;;  %v2409_v42 = vrot.slane %v2381_v24, 4  ;;  %v2415_v36 = vrot.slane %v2382_v54, 4  ;;  %v2346_v1 = vpop.f32.mrf.mxu3 }
 0x2ef   : > { %v2398_v43 = vmax.f32 %v2379_v41, %v2397_v30  ;;  %v2403_v2 = vrot.slane %v2380_v57, 4  ;;  %v2367_v13 = vadd.f32 %v4061_v29, %v2355_v3  ;;  %v2356_v61 = vadd.f32 %v2346_v1, %v2184_v50 }
 0x2f0   : > { %v2390_v8 = vmax.f32 %v2388_v40, %v2389_v63  ;;  %v2396_v44 = vmax.f32 %v2394_v14, %v2395_v12  ;;  %v2410_v25 = vmax.f32 %v2381_v24, %v2409_v42  ;;  %v2416_v20 = vmax.f32 %v2382_v54, %v2415_v36 }
 0x2f1   : > { %v2399_v46 = vrot.slane %v2398_v43, 2  ;;  %v2404_v47 = vmax.f32 %v2380_v57, %v2403_v2  ;;  %v2375_v4 = vmax.f32 %v2367_v13, 0.0  ;;  %v2368_v28 = vadd.f32 %v4061_v29, %v2356_v61 }
 0x2f2   : > { %v2433_v19 = vsub.f32 %v4065_v17, %v2390_v8  ;;  %v2434_v7 = vsub.f32 %v4067_v39, %v2396_v44  ;;  %v2411_v15 = vrot.slane %v2410_v25, 2  ;;  %v2417_v26 = vrot.slane %v2416_v20, 2 }
 0x2f3   : > { %v2400_v53 = vmax.f32 %v2398_v43, %v2399_v46  ;;  %v2405_v16 = vrot.slane %v2404_v47, 2  ;;  %v2383_v11 = vmul.f32 %v2375_v4, %v1794_v38  ;;  %v2376_v10 = vmax.f32 %v2368_v28, 0.0 }
 0x2f4   : > { %v2441_v9 = vmul.f32 1.442695, %v2433_v19  ;;  %v2443_v37 = vmul.f32 1.442695, %v2434_v7  ;;  %v2412_v35 = vmax.f32 %v2410_v25, %v2411_v15  ;;  %v2418_v6 = vmax.f32 %v2416_v20, %v2417_v26 }
 0x2f5   : > { %v2401_v45 = vrot.slane %v2400_v53, 1  ;;  %v2406_v51 = vmax.f32 %v2404_v47, %v2405_v16  ;;  %v2421_v0 = vrot.slane %v2383_v11, 4  ;;  %v2384_v22 = vmul.f32 %v2376_v10, %v1795_v52 }
 0x2f6   : > { %3225 = vpow2.f32 %v2441_v9  ;;  %v2413_v29 = vrot.slane %v2412_v35, 1  ;;  %v2419_v48 = vrot.slane %v2418_v6, 1 }
 0x2f7   : > { %3227 = vpow2.f32 %v2443_v37  ;;  %v2402_v17 = vmax.f32 %v2400_v53, %v2401_v45  ;;  %v2407_v39 = vrot.slane %v2406_v51, 1  ;;  %v2422_v21 = vmax.f32 %v2383_v11, %v2421_v0 }
 0x2f8   : > { %v2414_v27 = vmax.f32 %v2412_v35, %v2413_v29  ;;  %v2420_v23 = vmax.f32 %v2418_v6, %v2419_v48  ;;  %v2427_v56 = vrot.slane %v2384_v22, 4 }
 0x2f9   : > { %v2435_v38 = vsub.f32 %v2379_v41, %v2402_v17  ;;  %v2408_v40 = vmax.f32 %v2406_v51, %v2407_v39  ;;  %v2423_v14 = vrot.slane %v2422_v21, 2 }
 0x2fa   : > { %v2437_v49 = vsub.f32 %v2381_v24, %v2414_v27  ;;  %v2438_v50 = vsub.f32 %v2382_v54, %v2420_v23  ;;  %v2428_v30 = vmax.f32 %v2384_v22, %v2427_v56 }
 0x2fb   : > { %v2445_v3 = vmul.f32 1.442695, %v2435_v38  ;;  %v2436_v63 = vsub.f32 %v2380_v57, %v2408_v40  ;;  %v2424_v12 = vmax.f32 %v2422_v21, %v2423_v14 }
 0x2fc   : > { %v4087_v52 = vpop.eup %3225  ;;  %v2449_v42 = vmul.f32 1.442695, %v2437_v49  ;;  %v2451_v36 = vmul.f32 1.442695, %v2438_v50  ;;  %v2429_v1 = vrot.slane %v2428_v30, 2 }
 0x2fd   : > { %v4089_v43 = vpop.eup %3227  ;;  %v2457_v2 = vrot.slane %v4087_v52, 4  ;;  %3229 = vpow2.f32 %v2445_v3  ;;  %v2447_v13 = vmul.f32 1.442695, %v2436_v63  ;;  %v2425_v41 = vrot.slane %v2424_v12, 1 }
 0x2fe   : > { %v2463_v61 = vrot.slane %v4089_v43, 4  ;;  %3231 = vpow2.f32 %v2449_v42  ;;  %v2430_v24 = vmax.f32 %v2428_v30, %v2429_v1 }
 0x2ff   : > { %v2458_v54 = vadd.f32 %v4087_v52, %v2457_v2  ;;  %3233 = vpow2.f32 %v2447_v13  ;;  %v2426_v57 = vmax.f32 %v2424_v12, %v2425_v41 }
 0x300   : > { %v2464_v8 = vadd.f32 %v4089_v43, %v2463_v61  ;;  %3235 = vpow2.f32 %v2451_v36  ;;  %v2431_v44 = vrot.slane %v2430_v24, 1 }
 0x301   : > { %v2459_v25 = vrot.slane %v2458_v54, 2  ;;  %v2439_v20 = vsub.f32 %v2383_v11, %v2426_v57 }
 0x302   : > { %v2465_v46 = vrot.slane %v2464_v8, 2  ;;  %v2432_v47 = vmax.f32 %v2430_v24, %v2431_v44 }
 0x303   : > { %v4095_v4 = vpop.eup %3229  ;;  %v2460_v28 = vadd.f32 %v2459_v25, %v2458_v54  ;;  %v2453_v19 = vmul.f32 1.442695, %v2439_v20 }
 0x304   : > { %v4097_v7 = vpop.eup %3231  ;;  %v2466_v15 = vadd.f32 %v2465_v46, %v2464_v8  ;;  %v2469_v26 = vrot.slane %v4095_v4, 4  ;;  %v2440_v53 = vsub.f32 %v2384_v22, %v2432_v47 }
 0x305   : > { %v4100_v16 = vpop.eup %3233  ;;  %v2461_v10 = vrot.slane %v2460_v28, 1  ;;  %v2481_v9 = vrot.slane %v4097_v7, 4  ;;  %3237 = vpow2.f32 %v2453_v19 }
 0x306   : > { %v4103_v37 = vpop.eup %3235  ;;  %v2467_v11 = vrot.slane %v2466_v15, 1  ;;  %v2470_v35 = vadd.f32 %v4095_v4, %v2469_v26  ;;  %v2475_v6 = vrot.slane %v4100_v16, 4  ;;  %v2455_v45 = vmul.f32 1.442695, %v2440_v53 }
 0x307   : > { %v4107_v51 = vadd.f32 %v2461_v10, %v2460_v28  ;;  %v2482_v0 = vadd.f32 %v4097_v7, %v2481_v9  ;;  %v2487_v22 = vrot.slane %v4103_v37, 4 }
 0x308   : > { %v4111_v29 = vadd.f32 %v2467_v11, %v2466_v15  ;;  %v2471_v48 = vrot.slane %v2470_v35, 2  ;;  %v2476_v17 = vadd.f32 %v4100_v16, %v2475_v6  ;;  %3239 = vpow2.f32 %v2455_v45 }
 0x309   : > { %3241 = vrcp.f32 %v4107_v51  ;;  %v2483_v39 = vrot.slane %v2482_v0, 2  ;;  %v2488_v21 = vadd.f32 %v4103_v37, %v2487_v22  ;;  %vm2510_vm9 = vweird.f32 %v4107_v51 }
 0x30a   : > { %3243 = vrcp.f32 %v4111_v29  ;;  %v2472_v27 = vadd.f32 %v2471_v48, %v2470_v35  ;;  %v2477_v23 = vrot.slane %v2476_v17, 2  ;;  %v2514_v57 = vand.u32 2147483647, %v4107_v51 }
 0x30b   : > { %v4117_v56 = vpop.eup %3237  ;;  %v2484_v38 = vadd.f32 %v2483_v39, %v2482_v0  ;;  %v2489_v50 = vrot.slane %v2488_v21, 2  ;;  %v2516_v20 = vand.u32 2147483648, %v4107_v51  ;;  %vm2524_vm10 = vweird.f32 %v4111_v29 }
 0x30c   : > { %v2473_v40 = vrot.slane %v2472_v27, 1  ;;  %v2478_v14 = vadd.f32 %v2477_v23, %v2476_v17  ;;  %v2493_v49 = vrot.slane %v4117_v56, 4  ;;  %v2528_v26 = vand.u32 2147483647, %v4111_v29 }
 0x30d   : > { %v2485_v36 = vrot.slane %v2484_v38, 1  ;;  %v2490_v41 = vadd.f32 %v2489_v50, %v2488_v21  ;;  %vm4147_vm11 = vcmp.eq.f32.partialorder %v2514_v57, 8.507059e+37  ;;  %v2530_v35 = vand.u32 2147483648, %v4111_v29 }
 0x30e   : > { %v4120_v30 = vpop.eup %3239  ;;  %v4122_v3 = vadd.f32 %v2473_v40, %v2472_v27  ;;  %v2479_v63 = vrot.slane %v2478_v14, 1  ;;  %v2494_v12 = vadd.f32 %v4117_v56, %v2493_v49  ;;  %v2517_v27 = vor.u32 1.1754944e-38, %v2516_v20 }
 0x30f   : > { %v4125_v42 = vpop.eup %3241  ;;  %v2499_v1 = vrot.slane %v4120_v30, 4  ;;  %v4141_v46 = vadd.f32 %v2485_v36, %v2484_v38  ;;  %v2491_v19 = vrot.slane %v2490_v41, 1  ;;  %vm4163_vm14 = vcmp.eq.f32.partialorder %v2528_v26, 8.507059e+37 }
 0x310   : > { %v4128_v2 = vpop.eup %3243  ;;  %v4130_v13 = vadd.f32 %v2479_v63, %v2478_v14  ;;  %v2495_v61 = vrot.slane %v2494_v12, 2  ;;  %v2506_v24 = vmul.f32 %v4125_v42, %v4107_v51  ;;  %3245 = vrcp.f32 %v4122_v3 }
 0x311   : > { %v2500_v54 = vadd.f32 %v4120_v30, %v2499_v1  ;;  %v2520_v8 = vmul.f32 %v4128_v2, %v4111_v29  ;;  %vm2511_vm12 = vweird.f32 %v4125_v42  ;;  %v2542_v45 = vand.u32 2147483647, %v4122_v3 }
 0x312   : > { %v2496_v44 = vadd.f32 %v2495_v61, %v2494_v12  ;;  %v2507_v25 = vsub.f32 1.0, %v2506_v24  ;;  %3247 = vrcp.f32 %v4130_v13  ;;  %v2544_v0 = vand.u32 2147483648, %v4122_v3  ;;  %vm4171_vm15 = vmor %vm2510_vm9, %vm2511_vm12 }
 0x313   : > { %v2501_v47 = vrot.slane %v2500_v54, 2  ;;  %v2521_v28 = vsub.f32 1.0, %v2520_v8  ;;  %vm2525_vm13 = vweird.f32 %v4128_v2  ;;  %v2556_v48 = vand.u32 2147483647, %v4130_v13 }
 0x314   : > { %v2508_v15 = vmul.f32 %v4125_v42, %v2507_v25  ;;  %v2497_v53 = vrot.slane %v2496_v44, 1  ;;  %3249 = vrcp.f32 %v4141_v46  ;;  %v4161_v39 = vadd.f32 %v2491_v19, %v2490_v41  ;;  %vm4184_vm2 = vmor %vm2524_vm10, %vm2525_vm13 }
 0x315   : > { %v2502_v10 = vadd.f32 %v2501_v47, %v2500_v54  ;;  %v2522_v11 = vmul.f32 %v4128_v2, %v2521_v28  ;;  %v2531_v14 = vor.u32 1.1754944e-38, %v2530_v35  ;;  %vm2538_vm1 = vweird.f32 %v4122_v3 }
 0x316   : > { %v2509_v6 = vadd.f32 %v4125_v42, %v2508_v15  ;;  %v3246_v17 = vpop.eup %3245  ;;  %v4167_v38 = vadd.f32 %v2497_v53, %v2496_v44  ;;  %vm4188_vm3 = vcmp.eq.f32.partialorder %v2542_v45, 8.507059e+37  ;;  %v2545_v36 = vor.u32 1.1754944e-38, %v2544_v0 }
 0x317   : > { %v2523_v22 = vadd.f32 %v4128_v2, %v2522_v11  ;;  %v2503_v21 = vrot.slane %v2502_v10, 1  ;;  %v2534_v49 = vmul.f32 %v3246_v17, %v4122_v3  ;;  %vm2552_vm4 = vweird.f32 %v4130_v13 }
 0x318   : > { %v3248_v50 = vpop.eup %3247  ;;  %v2513_v63 = vsel %vm4171_vm15, %v4125_v42, %v2509_v6  ;;  %v2558_v1 = vand.u32 2147483648, %v4130_v13  ;;  %vm4198_vm5 = vcmp.eq.f32.partialorder %v2556_v48, 8.507059e+37  ;;  %vm2539_vm6 = vweird.f32 %v3246_v17 }
 0x319   : > { %v2527_v42 = vsel %vm4184_vm2, %v4128_v2, %v2523_v22  ;;  %v2535_v41 = vsub.f32 1.0, %v2534_v49  ;;  %v2548_v29 = vmul.f32 %v3248_v50, %v4130_v13  ;;  %v4202_v24 = vadd.f32 %v2503_v21, %v2502_v10  ;;  %vm4219_vm9 = vmor %vm2538_vm1, %vm2539_vm6 }
 0x31a   : > { %vm2566_vm7 = vweird.f32 %v4141_v46  ;;  %v2570_v54 = vand.u32 2147483647, %v4141_v46  ;;  %3251 = vrcp.f32 %v4161_v39  ;;  %v3250_v57 = vpop.eup %3249  ;;  %v2572_v2 = vand.u32 2147483648, %v4141_v46 }
 0x31b   : > { %v2536_v8 = vmul.f32 %v3246_v17, %v2535_v41  ;;  %v2549_v44 = vsub.f32 1.0, %v2548_v29  ;;  %3253 = vrcp.f32 %v4167_v38  ;;  %v2518_v25 = vsel %vm4147_vm11, %v2517_v27, %v2513_v63 }
 0x31c   : > { %v2532_v20 = vsel %vm4163_vm14, %v2531_v14, %v2527_v42  ;;  %v2562_v47 = vmul.f32 %v3250_v57, %v4141_v46  ;;  %v2586_v28 = vand.u32 2147483648, %v4161_v39  ;;  %vm2553_vm8 = vweird.f32 %v3248_v50 }
 0x31d   : > { %v2537_v19 = vadd.f32 %v3246_v17, %v2536_v8  ;;  %v2550_v15 = vmul.f32 %v3248_v50, %v2549_v44  ;;  %v2584_v26 = vand.u32 2147483647, %v4161_v39  ;;  %v2559_v10 = vor.u32 1.1754944e-38, %v2558_v1  ;;  %vm2554_vm12 = vmor %vm2552_vm4, %vm2553_vm8 }
 0x31e   : > { %v2563_v9 = vsub.f32 1.0, %v2562_v47  ;;  %vm4223_vm10 = vcmp.eq.f32.partialorder %v2570_v54, 8.507059e+37  ;;  %3255 = vrcp.f32 %v4202_v24  ;;  %v2573_v45 = vor.u32 1.1754944e-38, %v2572_v2 }
 0x31f   : > { %v2541_v35 = vsel %vm4219_vm9, %v3246_v17, %v2537_v19  ;;  %v2551_v6 = vadd.f32 %v3248_v50, %v2550_v15  ;;  %vm2580_vm11 = vweird.f32 %v4161_v39  ;;  %vm2567_vm13 = vweird.f32 %v3250_v57 }
 0x320   : > { %v3252_v3 = vpop.eup %3251  ;;  %v2564_v0 = vmul.f32 %v3250_v57, %v2563_v9  ;;  %v2587_v22 = vor.u32 1.1754944e-38, %v2586_v28  ;;  %vm2594_vm14 = vweird.f32 %v4167_v38  ;;  %v2546_v21 = vsel %vm4188_vm3, %v2545_v36, %v2541_v35  ;;  %vm2568_vm1 = vmor %vm2566_vm7, %vm2567_vm13 }
 0x321   : > { %v3254_v48 = vpop.eup %3253  ;;  %v2555_v27 = vsel %vm2554_vm12, %v3248_v50, %v2551_v6  ;;  %v2576_v17 = vmul.f32 %v3252_v3, %v4161_v39  ;;  %vm4237_vm15 = vcmp.eq.f32.partialorder %v2584_v26, 8.507059e+37  ;;  %v2598_v40 = vand.u32 2147483647, %v4167_v38 }
 0x322   : > { %v2560_v13 = vsel %vm4198_vm5, %v2559_v10, %v2555_v27  ;;  %v2565_v14 = vadd.f32 %v3250_v57, %v2564_v0  ;;  %v2590_v49 = vmul.f32 %v3254_v48, %v4167_v38  ;;  %v2600_v63 = vand.u32 2147483648, %v4167_v38 }
 0x323   : > { %v2577_v50 = vsub.f32 1.0, %v2576_v17  ;;  %v2612_v51 = vand.u32 2147483647, %v4202_v24  ;;  %v2617_v12 = vmul.f32 %v4087_v52, %v2518_v25  ;;  %v2618_v36 = vmul.f32 %v4089_v43, %v2532_v20 }
 0x324   : > { %v3256_v1 = vpop.eup %3255  ;;  %v2569_v42 = vsel %vm2568_vm1, %v3250_v57, %v2565_v14  ;;  %v2591_v41 = vsub.f32 1.0, %v2590_v49  ;;  %v2619_v29 = vmul.f32 %v4095_v4, %v2546_v21  ;;  %v2620_v61 = vmul.f32 %v4100_v16, %v2560_v13 }
 0x325   : > { %v2574_v54 = vsel %vm4223_vm10, %v2573_v45, %v2569_v42  ;;  %v2578_v8 = vmul.f32 %v3252_v3, %v2577_v50  ;;  %vm2581_vm2 = vweird.f32 %v3252_v3  ;;  %v2604_v46 = vmul.f32 %v3256_v1, %v4202_v24 }
 0x326   : > { %v2592_v44 = vmul.f32 %v3254_v48, %v2591_v41  ;;  %vm2595_vm3 = vweird.f32 %v3254_v48  ;;  %v3089_v2 = vadd.f32 -0.125, %v2617_v12  ;;  %v3090_v52 = vadd.f32 -0.125, %v2618_v36  ;;  %vm2582_vm4 = vmor %vm2580_vm11, %vm2581_vm2 }
 0x327   : > { %v2579_v25 = vadd.f32 %v3252_v3, %v2578_v8  ;;  %v2605_v43 = vsub.f32 1.0, %v2604_v46  ;;  %v2614_v57 = vand.u32 2147483648, %v4202_v24  ;;  %v3091_v20 = vadd.f32 -0.125, %v2619_v29  ;;  %vm2596_vm5 = vmor %vm2594_vm14, %vm2595_vm3 }
 0x328   : > { %v2593_v4 = vadd.f32 %v3254_v48, %v2592_v44  ;;  %v2621_v16 = vmul.f32 %v4097_v7, %v2574_v54  ;;  %v3092_v47 = vadd.f32 -0.125, %v2620_v61  ;;  %v2633_v28 = vadd.f32 %v3090_v52, %v3089_v2 }
 0x329   : > { %v2583_v19 = vsel %vm2582_vm4, %v3252_v3, %v2579_v25  ;;  %v2601_v15 = vor.u32 1.1754944e-38, %v2600_v63  ;;  %v2606_v26 = vmul.f32 %v3256_v1, %v2605_v43  ;;  %vm2609_vm6 = vweird.f32 %v3256_v1 }
 0x32a   : > { %v2588_v53 = vsel %vm4237_vm15, %v2587_v22, %v2583_v19  ;;  %v2597_v10 = vsel %vm2596_vm5, %v3254_v48, %v2593_v4  ;;  %vm2599_vm7 = vcmp.eq.f32.partialorder %v2598_v40, 8.507059e+37  ;;  %v2634_v9 = vadd.f32 %v3091_v20, %v2633_v28 }
 0x32b   : > { %v2602_v39 = vsel %vm2599_vm7, %v2601_v15, %v2597_v10  ;;  %v2607_v11 = vadd.f32 %v3256_v1, %v2606_v26  ;;  %vm2608_vm8 = vweird.f32 %v4202_v24  ;;  %v2622_v7 = vmul.f32 %v4103_v37, %v2588_v53 }
 0x32c   : > { %vm2610_vm9 = vmor %vm2608_vm8, %vm2609_vm6  ;;  %v2615_v35 = vor.u32 1.1754944e-38, %v2614_v57  ;;  %v2623_v38 = vmul.f32 %v4117_v56, %v2602_v39  ;;  %v3093_v6 = vadd.f32 -0.125, %v2621_v16  ;;  %v2635_v45 = vadd.f32 %v3092_v47, %v2634_v9 }
 0x32d   : > { %v2611_v3 = vsel %vm2610_vm9, %v3256_v1, %v2607_v11  ;;  %vm2613_vm10 = vcmp.eq.f32.partialorder %v2612_v51, 8.507059e+37  ;;  %v3094_v21 = vadd.f32 -0.125, %v2622_v7  ;;  %vm2826_vm14 = vcmask 1040384  }
 0x32e   : > { %v2616_v0 = vsel %vm2613_vm10, %v2615_v35, %v2611_v3  ;;  %v3095_v22 = vadd.f32 -0.125, %v2623_v38  ;;  %v2636_v48 = vadd.f32 %v3093_v6, %v2635_v45  ;;  %vm2828_vm15 = vcmask 1042434  }
 0x32f   : > { %v2624_v27 = vmul.f32 %v4120_v30, %v2616_v0  ;;  %vm2830_vm1 = vcmask 1041408   ;;  %vm2832_vm2 = vcmask 1044484   ;;  %vm2834_vm3 = vcmask 1046534  }
 0x330   : > { %v2637_v17 = vadd.f32 %v3094_v21, %v2636_v48  ;;  %v835_v48 = vadd.f32 %v3725_v59, %v3699_v33  ;;  %v4455_v33 = vld [vmem:[#allocation11_spill] sm:$0xff]  ;;  %vm2836_vm4 = vcmask 1045508  }
 0x331   : > { %v3096_v23 = vadd.f32 -0.125, %v2624_v27  ;;  %v4453_v27 = vld [vmem:[#allocation9_spill] sm:$0xff] }
 0x332   : > { %v2638_v40 = vadd.f32 %v3095_v22, %v2637_v17  ;;  %v809_v17 = vadd.f32 %v4453_v27, %v3701_v34  ;;  %v4456_v34 = vld [vmem:[#allocation10_spill] sm:$0xff] }
 0x333   : > { %v213_v27 = vld [vmem:[#allocation2 + $0x60] sm:$0xff] }
 0x334   : > { %v2639_v24 = vadd.f32 %v3096_v23, %v2638_v40  ;;  %v4454_v40 = vld [vmem:[#allocation8_spill] sm:$0xff] }
 0x336   : > { %2640 = vadd.xlane.f32.xlu2 %v2639_v24  ;;  %v887_v24 = vadd.f32 %v3729_v62, %v4454_v40  ;;  %v4457_v62 = vld [vmem:[#allocation12_spill] sm:$0xff] }
 0x3a9   : > { %v2641_v37 = vpop.xlane.xlu2 %2640 }
 0x3aa   : > { %v2642_v13 = vrot.slane %v2641_v37, 4 }
 0x3ac   : > { %v2643_v14 = vadd.f32 %v2642_v13, %v2641_v37  ;;  %v1151_v13 = vadd.f32 %v4047_v32, %v835_v48  ;;  %v212_v48 = vld [vmem:[#allocation2 + $0x58] sm:$0xff] }
 0x3ae   : > { %v2644_v49 = vrot.slane %v2643_v14, 2 }
 0x3b0   : > { %v2645_v56 = vadd.f32 %v2644_v49, %v2643_v14  ;;  %v1150_v14 = vadd.f32 %v3978_v60, %v809_v17  ;;  %v218_v49 = vld [vmem:[#allocation2 + $0x80] ss:$8 sm:$0xf] }
 0x3b2   : > { %v2646_v63 = vrot.slane %v2645_v56, 1 }
 0x3b4   : > { %v2647_v50 = vadd.f32 %v2646_v63, %v2645_v56  ;;  %v219_v56 = vld [vmem:[#allocation2 + $0x80] ss:$8 sm:$0xf0] }
 0x3b6   : > { %3102 = vpush %v2647_v50 }
 0x3e7   : > { %s3103_s5 = spop %3102 }
 0x3e8   : > { %s2649_s6 = smul.f32 0.00012207031, %s3103_s5 }
 0x3ea   : > { %v2650_v51 = vstv %s2649_s6  ;;  %s3309_s6 = scalar_lea.hbm %s4423_s3, 16 }
 0x3eb   : > { %v4268_v12 = vsub.f32 %v3089_v2, %v2650_v51  ;;  %v4270_v36 = vsub.f32 %v3090_v52, %v2650_v51  ;;  %v4272_v30 = vsub.f32 %v3091_v20, %v2650_v51  ;;  %v4274_v1 = vsub.f32 %v3092_v47, %v2650_v51  ;;  %p3311_p4 = scmp.lt.s32.totalorder %s3309_s6, %s3305_s30 }
 0x3ec   : > { %v4280_v29 = vsub.f32 %v3093_v6, %v2650_v51  ;;  %v4284_v8 = vsub.f32 %v3094_v21, %v2650_v51  ;;  %v4288_v2 = vsub.f32 %v3095_v22, %v2650_v51  ;;  %v4292_v43 = vsub.f32 %v3096_v23, %v2650_v51  ;;  %v1164_v23 = vpop.permute.xlu1 %1163 }
 0x3ed   : > { %v2659_v42 = vmul.f32 %v4268_v12, %v4268_v12  ;;  %v2660_v41 = vmul.f32 %v4270_v36, %v4270_v36  ;;  %v2661_v61 = vmul.f32 %v4272_v30, %v4272_v30  ;;  %v2662_v46 = vmul.f32 %v4274_v1, %v4274_v1  ;;  %p3312_p7 = por %p3311_p4, %p3310_p3 }
 0x3ee   : > { %v2663_v52 = vmul.f32 %v4280_v29, %v4280_v29  ;;  %v2664_v57 = vmul.f32 %v4284_v8, %v4284_v8  ;;  %v2665_v4 = vmul.f32 %v4288_v2, %v4288_v2  ;;  %v2666_v47 = vmul.f32 %v4292_v43, %v4292_v43 }
 0x3ef   : > { %v2667_v54 = vadd.f32 %v2660_v41, %v2659_v42  ;;  %v861_v22 = vadd.f32 %v3723_v58, %v3697_v31  ;;  %v1153_v31 = vadd.f32 %v4051_v5, %v887_v24  ;;  %v4313_v58 = vadd.f32 %v1164_v23, %v3773_v18  ;;  %p3313_p8 = pnand %p3312_p7, %p3308_p2 }
 0x3f0   : > { %v4316_v59 = vadd.f32 %v1164_v23, %v4455_v33  ;;  %v4319_v63 = vadd.f32 %v1164_v23, %v4456_v34  ;;  %v4322_v50 = vadd.f32 %v1164_v23, %v4457_v62  ;;  %v4326_v32 = vadd.f32 %v1164_v23, %v1151_v13  ;;  %v215_v13 = vld [vmem:[#allocation2 + $0x70] sm:$0xff] }
 0x3f1   : > { %v2668_v44 = vadd.f32 %v2667_v54, %v2661_v61  ;;  %v1152_v37 = vadd.f32 %v4049_v55, %v861_v22  ;;  %v4324_v55 = vadd.f32 %v1164_v23, %v1150_v14  ;;  %v4330_v51 = vadd.f32 %v1164_v23, %v1153_v31  ;;  %v211_v22 = vld [vmem:[#allocation2 + $0x50] sm:$0xff]  ;;  %v216_v14 = vld [vmem:[#allocation2 + $0x78] sm:$0xff] }
 0x3f2   : > { %v4332_v5 = vor.u32 %v219_v56, %v218_v49  ;;  %v1206_v18 = vmax.f32 %v4313_v58, 0.0  ;;  %v1207_v42 = vmax.f32 %v4316_v59, 0.0  ;;  %v1208_v41 = vmax.f32 %v4319_v63, 0.0 }
 0x3f3   : > { %v2669_v25 = vadd.f32 %v2668_v44, %v2662_v46  ;;  %v4328_v60 = vadd.f32 %v1164_v23, %v1152_v37  ;;  %v1209_v61 = vmax.f32 %v4322_v50, 0.0  ;;  %v1210_v54 = vmax.f32 %v4324_v55, 0.0  ;;  %v201_v44 = vld [vmem:[#allocation2] sm:$0xff]  ;;  %v214_v37 = vld [vmem:[#allocation2 + $0x68] sm:$0xff] }
 0x3f4   : > { %v1211_v46 = vmax.f32 %v4326_v32, 0.0 }
 0x3f5   : > { %v2670_v20 = vadd.f32 %v2669_v25, %v2663_v52  ;;  %v202_v52 = vld [vmem:[#allocation2 + $0x8] sm:$0xff]  ;;  %v203_v25 = vld [vmem:[#allocation2 + $0x10] sm:$0xff] }
 0x3f7   : > { %v2671_v16 = vadd.f32 %v2670_v20, %v2664_v57  ;;  %v1212_v57 = vmax.f32 %v4328_v60, 0.0  ;;  %v1213_v20 = vmax.f32 %v4330_v51, 0.0 }
 0x3f9   : > { %v2672_v28 = vadd.f32 %v2671_v16, %v2665_v4  ;;  %v204_v4 = vld [vmem:[#allocation2 + $0x18] sm:$0xff]  ;;  %v205_v16 = vld [vmem:[#allocation2 + $0x20] sm:$0xff] }
 0x3fb   : > { %v2673_v19 = vadd.f32 %v2672_v28, %v2666_v47  ;;  %v206_v47 = vld [vmem:[#allocation2 + $0x28] sm:$0xff]  ;;  %v2779_v28 = vperm.slane %v4332_v5, 0 }
 0x3fd   : > { %2674 = vadd.xlane.f32.xlu0 %v2673_v19  ;;  %v207_v19 = vld [vmem:[#allocation2 + $0x30] sm:$0xff] }
 0x470   : > { %v2675_v15 = vpop.xlane.xlu0 %2674 }
 0x471   : > { %v2676_v26 = vrot.slane %v2675_v15, 4 }
 0x473   : > { %v2677_v53 = vadd.f32 %v2676_v26, %v2675_v15  ;;  %v208_v15 = vld [vmem:[#allocation2 + $0x38] sm:$0xff]  ;;  %v2780_v26 = vperm.slane %v4332_v5, 1 }
 0x475   : > { %v2678_v10 = vrot.slane %v2677_v53, 2 }
 0x477   : > { %v2679_v9 = vadd.f32 %v2678_v10, %v2677_v53  ;;  %v2781_v53 = vperm.slane %v4332_v5, 2  ;;  %v2782_v10 = vperm.slane %v4332_v5, 3 }
 0x479   : > { %v2680_v39 = vrot.slane %v2679_v9, 1 }
 0x47b   : > { %v2681_v11 = vadd.f32 %v2680_v39, %v2679_v9  ;;  %v2783_v9 = vperm.slane %v4332_v5, 4 }
 0x47d   : > { %3104 = vpush %v2681_v11  ;;  %v2784_v11 = vperm.slane %v4332_v5, 5 }
 0x4ae   : > { %s3105_s7 = spop %3104 }
 0x4af   : > { %s2683_s8 = smul.f32 0.00012207031, %s3105_s7 }
 0x4b1   : > { %s2684_s10 = sadd.f32 1e-05, %s2683_s8 }
 0x4b3   : > { %v2685_v7 = vstv %s2684_s10 }
 0x4b4   : > { %3257 = vrsqrt.f32 %v2685_v7  ;;  %vm2692_vm12 = vweird.f32 %v2685_v7 }
 0x4ba   : > { %v3258_v35 = vpop.eup %3257 }
 0x4bb   : > { %v2687_v38 = vmul.f32 %v3258_v35, %v2685_v7  ;;  %vm2693_vm11 = vweird.f32 %v3258_v35  ;;  %v2785_v7 = vperm.slane %v4332_v5, 6 }
 0x4bc   : > { %vm2694_vm13 = vmor %vm2692_vm12, %vm2693_vm11 }
 0x4bd   : > { %v2688_v6 = vmul.f32 %v3258_v35, %v2687_v38  ;;  %v209_v38 = vld [vmem:[#allocation2 + $0x40] sm:$0xff] }
 0x4bf   : > { %v2689_v45 = vmul.f32 0.5, %v2688_v6  ;;  %v210_v6 = vld [vmem:[#allocation2 + $0x48] sm:$0xff] }
 0x4c1   : > { %v2690_v3 = vsub.f32 1.5, %v2689_v45 }
 0x4c3   : > { %v2691_v0 = vmul.f32 %v3258_v35, %v2690_v3 }
 0x4c5   : > { %v2695_v21 = vsel %vm2694_vm13, %v3258_v35, %v2691_v0  ;;  %v2786_v35 = vperm.slane %v4332_v5, 7 }
 0x4c6   : > { %3106 = vpush %v2695_v21 }
 0x4f7   : > { %s3107_s11 = spop %3106 }
 0x4f8   : > { %v2697_v39 = vstv %s3107_s11 }
 0x4f9   : > { %v2698_v45 = vmul.f32 %v2697_v39, %v201_v44  ;;  %v2699_v3 = vmul.f32 %v2697_v39, %v202_v52  ;;  %v2700_v0 = vmul.f32 %v2697_v39, %v203_v25  ;;  %v2701_v21 = vmul.f32 %v2697_v39, %v204_v4 }
 0x4fa   : > { %v2702_v17 = vmul.f32 %v2697_v39, %v205_v16  ;;  %v2703_v23 = vmul.f32 %v2697_v39, %v206_v47  ;;  %v2704_v40 = vmul.f32 %v2697_v39, %v207_v19  ;;  %v2705_v24 = vmul.f32 %v2697_v39, %v208_v15 }
 0x4fb   : > { %v2706_v49 = vmul.f32 %v2698_v45, %v4268_v12  ;;  %v2707_v56 = vmul.f32 %v2699_v3, %v4270_v36  ;;  %v2708_v31 = vmul.f32 %v2700_v0, %v4272_v30  ;;  %v2709_v58 = vmul.f32 %v2701_v21, %v4274_v1 }
 0x4fc   : > { %v2710_v33 = vmul.f32 %v2702_v17, %v4280_v29  ;;  %v2711_v59 = vmul.f32 %v2703_v23, %v4284_v8  ;;  %v2712_v34 = vmul.f32 %v2704_v40, %v4288_v2  ;;  %v2713_v63 = vmul.f32 %v2705_v24, %v4292_v43 }
 0x4fd   : > { %v2714_v62 = vadd.f32 %v2706_v49, %v209_v38  ;;  %v2715_v50 = vadd.f32 %v2707_v56, %v210_v6  ;;  %v2716_v55 = vadd.f32 %v2708_v31, %v211_v22  ;;  %v2717_v32 = vadd.f32 %v2709_v58, %v212_v48 }
 0x4fe   : > { %v2718_v60 = vadd.f32 %v2710_v33, %v213_v27  ;;  %v2719_v12 = vadd.f32 %v2711_v59, %v214_v37  ;;  %v2720_v51 = vadd.f32 %v2712_v34, %v215_v13  ;;  %v2721_v36 = vadd.f32 %v2713_v63, %v216_v14 }
 0x4ff   : > { %v2722_v44 = vmul.f32 %v2714_v62, %v1206_v18  ;;  %v2723_v30 = vmul.f32 %v2715_v50, %v1207_v42  ;;  %v2724_v52 = vmul.f32 %v2716_v55, %v1208_v41  ;;  %v2725_v1 = vmul.f32 %v2717_v32, %v1209_v61 }
 0x500   : > { %v2726_v25 = vmul.f32 %v2718_v60, %v1210_v54  ;;  %v2727_v29 = vmul.f32 %v2719_v12, %v1211_v46  ;;  %v2728_v4 = vmul.f32 %v2720_v51, %v1212_v57  ;;  %v2729_v8 = vmul.f32 %v2721_v36, %v1213_v20 }
 0x501   : > { %v2730_v16 = vrot.slane %v2722_v44, 4  ;;  %v2736_v2 = vrot.slane %v2723_v30, 4  ;;  %v2742_v47 = vrot.slane %v2724_v52, 4  ;;  %v2748_v43 = vrot.slane %v2725_v1, 4 }
 0x502   : > { %v2754_v19 = vrot.slane %v2726_v25, 4  ;;  %v2760_v15 = vrot.slane %v2727_v29, 4  ;;  %v2766_v39 = vrot.slane %v2728_v4, 4  ;;  %v2772_v38 = vrot.slane %v2729_v8, 4 }
 0x503   : > { %v2737_v6 = vadd.f32 %v2736_v2, %v2723_v30  ;;  %v2743_v45 = vadd.f32 %v2742_v47, %v2724_v52  ;;  %v2749_v3 = vadd.f32 %v2748_v43, %v2725_v1  ;;  %v2731_v0 = vadd.f32 %v2730_v16, %v2722_v44 }
 0x504   : > { %v2755_v18 = vadd.f32 %v2754_v19, %v2726_v25  ;;  %v2761_v42 = vadd.f32 %v2760_v15, %v2727_v29  ;;  %v2767_v41 = vadd.f32 %v2766_v39, %v2728_v4  ;;  %v2773_v61 = vadd.f32 %v2772_v38, %v2729_v8 }
 0x505   : > { %v2732_v54 = vrot.slane %v2731_v0, 2  ;;  %v2738_v46 = vrot.slane %v2737_v6, 2  ;;  %v2744_v57 = vrot.slane %v2743_v45, 2  ;;  %v2750_v20 = vrot.slane %v2749_v3, 2 }
 0x506   : > { %v2756_v21 = vrot.slane %v2755_v18, 2  ;;  %v2762_v22 = vrot.slane %v2761_v42, 2  ;;  %v2768_v48 = vrot.slane %v2767_v41, 2  ;;  %v2774_v27 = vrot.slane %v2773_v61, 2 }
 0x507   : > { %v2733_v17 = vadd.f32 %v2732_v54, %v2731_v0  ;;  %v2739_v23 = vadd.f32 %v2738_v46, %v2737_v6  ;;  %v2745_v40 = vadd.f32 %v2744_v57, %v2743_v45  ;;  %v2751_v24 = vadd.f32 %v2750_v20, %v2749_v3 }
 0x508   : > { %v2757_v37 = vadd.f32 %v2756_v21, %v2755_v18  ;;  %v2763_v13 = vadd.f32 %v2762_v22, %v2761_v42  ;;  %v2769_v14 = vadd.f32 %v2768_v48, %v2767_v41  ;;  %v2775_v49 = vadd.f32 %v2774_v27, %v2773_v61 }
 0x509   : > { %v2734_v56 = vrot.slane %v2733_v17, 1  ;;  %v2740_v31 = vrot.slane %v2739_v23, 1  ;;  %v2746_v58 = vrot.slane %v2745_v40, 1  ;;  %v2752_v33 = vrot.slane %v2751_v24, 1 }
 0x50a   : > { %v2758_v59 = vrot.slane %v2757_v37, 1  ;;  %v2764_v34 = vrot.slane %v2763_v13, 1  ;;  %v2770_v63 = vrot.slane %v2769_v14, 1  ;;  %v2776_v62 = vrot.slane %v2775_v49, 1 }
 0x50b   : > { %v2735_v50 = vadd.f32 %v2734_v56, %v2733_v17  ;;  %v2741_v55 = vadd.f32 %v2740_v31, %v2739_v23  ;;  %v2747_v32 = vadd.f32 %v2746_v58, %v2745_v40  ;;  %v2753_v60 = vadd.f32 %v2752_v33, %v2751_v24 }
 0x50c   : > { %v2759_v12 = vadd.f32 %v2758_v59, %v2757_v37  ;;  %v2765_v51 = vadd.f32 %v2764_v34, %v2763_v13  ;;  %v2771_v36 = vadd.f32 %v2770_v63, %v2769_v14  ;;  %v2777_v44 = vadd.f32 %v2776_v62, %v2775_v49 }
 0x50d   : > { %v2795_v30 = vadd.f32 %v2779_v28, %v2735_v50  ;;  %v2796_v52 = vadd.f32 %v2780_v26, %v2741_v55  ;;  %v2797_v1 = vadd.f32 %v2781_v53, %v2747_v32  ;;  %v2798_v25 = vadd.f32 %v2782_v10, %v2753_v60 }
 0x50e   : > { %v2799_v29 = vadd.f32 %v2783_v9, %v2759_v12  ;;  %v2800_v4 = vadd.f32 %v2784_v11, %v2765_v51  ;;  %v2801_v8 = vadd.f32 %v2785_v7, %v2771_v36  ;;  %v2802_v28 = vadd.f32 %v2786_v35, %v2777_v44 }
 0x50f   : > { %v2804_v16 = vmax.f32 %v2796_v52, 0.0  ;;  %v2805_v26 = vmax.f32 %v2797_v1, 0.0  ;;  %v2806_v2 = vmax.f32 %v2798_v25, 0.0  ;;  %v2803_v11 = vmax.f32 %v2795_v30, 0.0 }
 0x510   : > { %v2807_v53 = vmax.f32 %v2799_v29, 0.0  ;;  %v2808_v10 = vmax.f32 %v2800_v4, 0.0  ;;  %v2809_v9 = vmax.f32 %v2801_v8, 0.0  ;;  %v2810_v47 = vmax.f32 %v2802_v28, 0.0 }
 0x511   : > { %v2819_v43 = vrot.slane %v2804_v16, 7  ;;  %v2820_v19 = vrot.slane %v2805_v26, 6  ;;  %v2821_v7 = vrot.slane %v2806_v2, 5 }
 0x512   : > { %v2822_v15 = vrot.slane %v2807_v53, 4  ;;  %v2823_v5 = vrot.slane %v2808_v10, 3  ;;  %v2824_v35 = vrot.slane %v2809_v9, 2  ;;  %v2825_v39 = vrot.slane %v2810_v47, 1 }
 0x513   : > { %v2827_v38 = vsel %vm2826_vm14, %v2803_v11, %v2819_v43  ;;  %v2829_v6 = vsel %vm2828_vm15, %v2820_v19, %v2821_v7 }
 0x514   : > { %v2831_v45 = vsel %vm2830_vm1, %v2827_v38, %v2829_v6  ;;  %v2833_v3 = vsel %vm2832_vm2, %v2822_v15, %v2823_v5  ;;  %v2835_v0 = vsel %vm2834_vm3, %v2824_v35, %v2825_v39 }
 0x515   : > { %v2837_v18 = vsel %vm2836_vm4, %v2833_v3, %v2835_v0 }
 0x516   : > { %v2838_v42 = vsel %vm423_vm0, %v2831_v45, %v2837_v18 }
 0x517   : > { %2840 = vst [vmem:[%s180_s26] sm:$0xff] %v2838_v42 }
 0x518   : > { %3316 = shalt.err (!%p3313_p8)
}
 0x519   : > { %3112 = dma.vmem_to_hbm [thread:$0]  (%p3421_p5), %s2855_s27, 128, %s2857_s28, %s2842_s17  }
 0x51a PF: > { %p3124_p9 = scmp.ge.s32.totalorder %s3355_s15, 2  ;;  %s2868_s10 = sand.u32 1, %s3343_s12  }
 0x51b   : > { %s2869_s11 = scalar_lea.sflag [#allocation4], %s2868_s10 }
 0x51c   : > { %p3119_p10 = pnand %p3124_p9, %p3425_p6 }
 0x51e   : > { %p3120_p11 = pneg %p3119_p10 }
 0x520   : > { %3338 = dma.done.wait (%p3120_p11), %s2869_s11, 128  }
 0x521   : > { %3340 = vsyncadd (%p3120_p11), %s2869_s11, 4294967168  ;;  %p14_p12 = scmp.ge.s32.totalorder %s3408_s18, 4   ;;  %s4458_s12 = smov %s3347_s13 }
 0x522   : > { %s4459_s13 = smov %s3351_s14  ;;  %s4460_s14 = smov %s3419_s21 }
 0x523   : > { %s4461_s15 = smov %s3408_s18  ;;  %16 = sbr.rel (!%p14_p12) target bundleno = 4 (0x4), region = 82 }
 0x528   :  { %2875 = vsyncpa [#allocation3], 1 }
 0x529   :  { %2877 = vsyncpa [#allocation3 + $0x1], 1 }
 0x52a   :  { %2878 = vsyncpa [#allocation4], 1 }
 0x52b   :  { %2880 = vsyncpa [#allocation4 + $0x1], 1 }

</bundles_post_ra>
